<compile_context>
chip_gen: v7x
topology: tpu7x:2x2x1
jax: 0.10.0
libtpu: 0.0.40
codegen_flags: <defaults>
</compile_context>

<pallas_src>
import numpy as np
import jax
import jax.numpy as jnp
from jax import lax
from jax.experimental import pallas as pl
from jax.experimental.pallas import tpu as pltpu  # noqa: F401  (TPU backend)

# ----------------------------- config ---------------------------------------
NUM_VOCAB = 100
PAD_ID = 0
EMBED = 32            # config.embedding_size
ENC_H = 32            # post/response_encoder_output_size
LATENT = 16           # config.latent_size
DIMS_HID = 32         # dims_prior / dims_recognize hidden width
BATCH = 2
SEQ = 8


# ------------------------- fused forward kernel ------------------------------
def fused_forward_kernel(xp_ref, xr_ref, lens_ref,
                         wih_p_ref, whh_p_ref, bih_p_ref, bhh_p_ref,
                         wih_r_ref, whh_r_ref, bih_r_ref, bhh_r_ref,
                         w1x_ref, w1y_ref, b1_ref, wmulv_ref, bmulv_ref,
                         eps_ref, z_ref):
    """Single-invocation kernel:
       x = GRU_post(xp),  y = GRU_resp(xr)   (PyTorch gate order r,z,n,
                                              pack_padded semantics via mask)
       h = tanh(x @ W1x + y @ W1y + b1)      (== tanh([x;y] @ W1 + b1))
       [mu|logvar] = h @ Wmulv + bmulv       (fused mu/logvar weight)
       z = mu + exp(0.5*logvar) * eps
    All operands are tiny and fully resident in VMEM (no grid, no per-step
    DMA).  The two GRU recurrences are interleaved in one unrolled loop so the
    scheduler overlaps their independent dependency chains."""
    T, B, E = xp_ref.shape
    H = whh_p_ref.shape[0]
    L = eps_ref.shape[-1]

    # Hoist all loop-invariant weight / bias loads out of the recurrence.
    wih_p = wih_p_ref[...]          # (E, 3H)  gates packed [r | z | n]
    whh_p = whh_p_ref[...]          # (H, 3H)
    bih_p = bih_p_ref[...]          # (1, 3H)
    bhh_p = bhh_p_ref[...]          # (1, 3H)
    wih_r = wih_r_ref[...]
    whh_r = whh_r_ref[...]
    bih_r = bih_r_ref[...]
    bhh_r = bhh_r_ref[...]
    lens_p = lens_ref[0]            # (B, 1) int32
    lens_r = lens_ref[1]            # (B, 1) int32

    def gru_cell(x_t, h, wih, whh, bih, bhh):
        # gi has no dependence on h -> with the fully-unrolled loop the
        # scheduler is free to hoist / pipeline these matmuls across steps.
        gi = jnp.dot(x_t, wih, preferred_element_type=jnp.float32) + bih
        gh = jnp.dot(h, whh, preferred_element_type=jnp.float32) + bhh
        r = jax.nn.sigmoid(gi[:, 0:H] + gh[:, 0:H])
        zg = jax.nn.sigmoid(gi[:, H:2 * H] + gh[:, H:2 * H])
        n = jnp.tanh(gi[:, 2 * H:3 * H] + r * gh[:, 2 * H:3 * H])
        return (1.0 - zg) * n + zg * h

    def step(t, carry):
        hp, hr = carry
        hp_new = gru_cell(xp_ref[t], hp, wih_p, whh_p, bih_p, bhh_p)
        hr_new = gru_cell(xr_ref[t], hr, wih_r, whh_r, bih_r, bhh_r)
        # steps with t >= length[b] leave h unchanged (pack_padded semantics).
        hp = jnp.where(t < lens_p, hp_new, hp)
        hr = jnp.where(t < lens_r, hr_new, hr)
        return (hp, hr)

    h0 = jnp.zeros((B, H), jnp.float32)
    hp, hr = lax.fori_loop(0, T, step, (h0, h0), unroll=True)

    # RecognizeNet: tanh MLP + fused [mu | logvar] head (no lane concat).
    h1 = jnp.tanh(jnp.dot(hp, w1x_ref[...], preferred_element_type=jnp.float32)
                  + jnp.dot(hr, w1y_ref[...], preferred_element_type=jnp.float32)
                  + b1_ref[...])
    mulv = jnp.dot(h1, wmulv_ref[...],
                   preferred_element_type=jnp.float32) + bmulv_ref[...]  # (B,2L)
    mu = mulv[:, :L]
    lv = mulv[:, L:2 * L]
    z_ref[...] = mu + jnp.exp(0.5 * lv) * eps_ref[...]


# --------------------------- jitted per-batch forward ------------------------
@jax.jit
def batch_forward(posts, responses, len_posts, len_responses, eps,
                  word2vec, enc_p, enc_r, rec):
    """Embedding gather + transpose (fused by XLA under the same jit) feeding
    the single fused Pallas kernel. Returns z of shape (B, LATENT)."""
    B, _ = posts.shape
    L = eps.shape[-1]
    # layout: time-major (T, B, E) so the kernel reads one (B, E) slab per step.
    xp = jnp.transpose(jnp.take(word2vec, posts, axis=0), (1, 0, 2))
    xr = jnp.transpose(jnp.take(word2vec, responses, axis=0), (1, 0, 2))
    lens = jnp.stack([len_posts, len_responses], axis=0).astype(jnp.int32)
    lens = lens.reshape(2, B, 1)
    return pl.pallas_call(
        fused_forward_kernel,
        out_shape=jax.ShapeDtypeStruct((B, L), jnp.float32),
    )(xp, xr, lens,
      enc_p["wih"], enc_p["whh"], enc_p["bih"], enc_p["bhh"],
      enc_r["wih"], enc_r["whh"], enc_r["bih"], enc_r["bhh"],
      rec["w1x"], rec["w1y"], rec["b1"], rec["wmulv"], rec["bmulv"],
      eps)


# ------------------------------ parameter init --------------------------------
def init_gru(key, E, H):
    """Fused-gate GRU weights, gate order [r | z | n] along the last axis."""
    k = jax.random.split(key, 4)
    s = 1.0 / np.sqrt(H)
    u = lambda kk, shp: jax.random.uniform(kk, shp, jnp.float32, -s, s)
    return dict(wih=u(k[0], (E, 3 * H)), whh=u(k[1], (H, 3 * H)),
                bih=u(k[2], (1, 3 * H)), bhh=u(k[3], (1, 3 * H)))


def init_recognize(key, d_x, d_y, d_hid, d_lat):
    """RecognizeNet: tanh MLP (first layer pre-split for x and y) + fused
    [mu | logvar] head."""
    k = jax.random.split(key, 5)
    s1 = 1.0 / np.sqrt(d_x + d_y)
    s2 = 1.0 / np.sqrt(d_hid)
    u = lambda kk, shp, sc: jax.random.uniform(kk, shp, jnp.float32, -sc, sc)
    return dict(w1x=u(k[0], (d_x, d_hid), s1), w1y=u(k[1], (d_y, d_hid), s1),
                b1=u(k[2], (1, d_hid), s1),
                wmulv=u(k[3], (d_hid, 2 * d_lat), s2),
                bmulv=u(k[4], (1, 2 * d_lat), s2))


def init_params(key):
    ks = jax.random.split(key, 8)
    params = {
        "word2vec": jax.random.normal(ks[0], (NUM_VOCAB, EMBED), jnp.float32)
                    .at[PAD_ID].set(0.0),
        "post_encoder": init_gru(ks[1], EMBED, ENC_H),
        "response_encoder": init_gru(ks[2], EMBED, ENC_H),
    }
    for i, branch in enumerate(["inform", "question", "directive"]):
        params[branch + "_recognize"] = init_recognize(
            ks[3 + i], ENC_H, ENC_H, DIMS_HID, LATENT)
    # NOTE: the *_prior_net outputs are computed-but-discarded in the PyTorch
    # forward; they are dead code and intentionally omitted here.
    return params


# ------------------------------ model forward ---------------------------------
def model_forward(batches, params, key):
    """Mirrors Model.forward: per mini-batch GRU-encode posts/responses, pick
    the act-conditional recognize net, reparameterise, collect z and labels.
    No device->host syncs inside the loop; results are fetched once at the end."""
    z_list, label_list = [], []
    for data in batches:
        act = data["act"]              # host-known act (same for the whole batch)
        if act == 0:
            branch = "inform"
        elif act == 1:
            branch = "question"
        elif act == 2:
            branch = "directive"
        else:
            continue                   # act >= 3 is skipped, as in the reference

        key, sub = jax.random.split(key)
        eps = jax.random.normal(sub, (data["posts"].shape[0], LATENT),
                                jnp.float32)
        z = batch_forward(data["posts"], data["responses"],
                          data["len_posts"], data["len_responses"], eps,
                          params["word2vec"],
                          params["post_encoder"], params["response_encoder"],
                          params[branch + "_recognize"])
        z_list.append(z)
        label_list.append(data["post_act"])

    jax.block_until_ready(z_list)
    z_s = np.concatenate([np.asarray(z) for z in z_list], 0)
    label_s = np.concatenate([np.asarray(l) for l in label_list], 0)
    return z_s, label_s


# ------------------------------------ main ------------------------------------
if __name__ == "__main__":
    params = init_params(jax.random.PRNGKey(0))

    def make_batch(seed, act):
        ks = jax.random.split(jax.random.PRNGKey(seed), 4)
        return {
            "posts": jax.random.randint(ks[0], (BATCH, SEQ), 1, NUM_VOCAB,
                                        dtype=jnp.int32),
            "responses": jax.random.randint(ks[1], (BATCH, SEQ), 1, NUM_VOCAB,
                                            dtype=jnp.int32),
            "len_posts": jax.random.randint(ks[2], (BATCH,), 3, SEQ + 1,
                                            dtype=jnp.int32),
            "len_responses": jax.random.randint(ks[3], (BATCH,), 3, SEQ + 1,
                                                dtype=jnp.int32),
            "post_act": jnp.full((BATCH, 1), act, dtype=jnp.int32),
            "act": act,   # host-side copy -> no per-batch device->host sync
        }

    # Two synthetic mini-batches (acts 0 and 1); act >= 3 would be skipped.
    batches = [make_batch(1, 0), make_batch(2, 1)]

    z_s, label_s = model_forward(batches, params, jax.random.PRNGKey(42))

    assert z_s.shape == (2 * BATCH, LATENT), z_s.shape
    assert label_s.shape == (2 * BATCH, 1), label_s.shape
    assert np.all(np.isfinite(z_s))
    print("KERNEL_OK")
</pallas_src>

<mosaic_0001>
module attributes {stable_mosaic.version = 11 : i64} {
  func.func @fused_forward_kernel(%arg0: memref<8x2x32xf32, #tpu.memory_space<vmem>>, %arg1: memref<8x2x32xf32, #tpu.memory_space<vmem>>, %arg2: memref<2x2x1xi32, #tpu.memory_space<vmem>>, %arg3: memref<32x96xf32, #tpu.memory_space<vmem>>, %arg4: memref<32x96xf32, #tpu.memory_space<vmem>>, %arg5: memref<1x96xf32, #tpu.memory_space<vmem>>, %arg6: memref<1x96xf32, #tpu.memory_space<vmem>>, %arg7: memref<32x96xf32, #tpu.memory_space<vmem>>, %arg8: memref<32x96xf32, #tpu.memory_space<vmem>>, %arg9: memref<1x96xf32, #tpu.memory_space<vmem>>, %arg10: memref<1x96xf32, #tpu.memory_space<vmem>>, %arg11: memref<32x32xf32, #tpu.memory_space<vmem>>, %arg12: memref<32x32xf32, #tpu.memory_space<vmem>>, %arg13: memref<1x32xf32, #tpu.memory_space<vmem>>, %arg14: memref<32x32xf32, #tpu.memory_space<vmem>>, %arg15: memref<1x32xf32, #tpu.memory_space<vmem>>, %arg16: memref<2x16xf32, #tpu.memory_space<vmem>>, %arg17: memref<2x16xf32, #tpu.memory_space<vmem>>) attributes {dimension_semantics = [], scalar_prefetch = 0 : i64, scratch_operands = 0 : i64, tpu.core_type = #tpu.core_type<tc>} {
    %c0 = arith.constant 0 : index
    %c0_0 = arith.constant 0 : index
    %0 = vector.load %arg3[%c0, %c0_0] : memref<32x96xf32, #tpu.memory_space<vmem>>, vector<32x96xf32>
    %c0_1 = arith.constant 0 : index
    %c0_2 = arith.constant 0 : index
    %1 = vector.load %arg4[%c0_1, %c0_2] : memref<32x96xf32, #tpu.memory_space<vmem>>, vector<32x96xf32>
    %c0_3 = arith.constant 0 : index
    %c0_4 = arith.constant 0 : index
    %2 = vector.load %arg5[%c0_3, %c0_4] : memref<1x96xf32, #tpu.memory_space<vmem>>, vector<1x96xf32>
    %c0_5 = arith.constant 0 : index
    %c0_6 = arith.constant 0 : index
    %3 = vector.load %arg6[%c0_5, %c0_6] : memref<1x96xf32, #tpu.memory_space<vmem>>, vector<1x96xf32>
    %c0_7 = arith.constant 0 : index
    %c0_8 = arith.constant 0 : index
    %4 = vector.load %arg7[%c0_7, %c0_8] : memref<32x96xf32, #tpu.memory_space<vmem>>, vector<32x96xf32>
    %c0_9 = arith.constant 0 : index
    %c0_10 = arith.constant 0 : index
    %5 = vector.load %arg8[%c0_9, %c0_10] : memref<32x96xf32, #tpu.memory_space<vmem>>, vector<32x96xf32>
    %c0_11 = arith.constant 0 : index
    %c0_12 = arith.constant 0 : index
    %6 = vector.load %arg9[%c0_11, %c0_12] : memref<1x96xf32, #tpu.memory_space<vmem>>, vector<1x96xf32>
    %c0_13 = arith.constant 0 : index
    %c0_14 = arith.constant 0 : index
    %7 = vector.load %arg10[%c0_13, %c0_14] : memref<1x96xf32, #tpu.memory_space<vmem>>, vector<1x96xf32>
    %c0_15 = arith.constant 0 : index
    %c0_16 = arith.constant 0 : index
    %c0_17 = arith.constant 0 : index
    %8 = vector.load %arg2[%c0_15, %c0_16, %c0_17] : memref<2x2x1xi32, #tpu.memory_space<vmem>>, vector<1x2x1xi32>
    %9 = vector.shape_cast %8 : vector<1x2x1xi32> to vector<2x1xi32>
    %c1 = arith.constant 1 : index
    %c0_18 = arith.constant 0 : index
    %c0_19 = arith.constant 0 : index
    %10 = vector.load %arg2[%c1, %c0_18, %c0_19] : memref<2x2x1xi32, #tpu.memory_space<vmem>>, vector<1x2x1xi32>
    %11 = vector.shape_cast %10 : vector<1x2x1xi32> to vector<2x1xi32>
    %cst = arith.constant 0.000000e+00 : f32
    %12 = vector.broadcast %cst : f32 to vector<2x32xf32>
    %c0_i32 = arith.constant 0 : i32
    %13 = arith.index_cast %c0_i32 : i32 to index
    %c0_20 = arith.constant 0 : index
    %c0_21 = arith.constant 0 : index
    %14 = vector.load %arg0[%13, %c0_20, %c0_21] : memref<8x2x32xf32, #tpu.memory_space<vmem>>, vector<1x2x32xf32>
    %15 = vector.shape_cast %14 : vector<1x2x32xf32> to vector<2x32xf32>
    %cst_22 = arith.constant dense<0.000000e+00> : vector<2x96xf32>
    %16 = tpu.matmul %15, %0, %cst_22 {dimension_numbers = #tpu.dot_dimension_numbers<[1], [0], [0], [1], [0, 0, 1, 1], [], []>} : vector<2x32xf32>, vector<32x96xf32>, vector<2x96xf32> -> vector<2x96xf32>
    %17 = vector.broadcast %2 : vector<1x96xf32> to vector<2x96xf32>
    %18 = arith.addf %16, %17 : vector<2x96xf32>
    %cst_23 = arith.constant dense<0.000000e+00> : vector<2x96xf32>
    %19 = tpu.matmul %12, %1, %cst_23 {dimension_numbers = #tpu.dot_dimension_numbers<[1], [0], [0], [1], [0, 0, 1, 1], [], []>} : vector<2x32xf32>, vector<32x96xf32>, vector<2x96xf32> -> vector<2x96xf32>
    %20 = vector.broadcast %3 : vector<1x96xf32> to vector<2x96xf32>
    %21 = arith.addf %19, %20 : vector<2x96xf32>
    %22 = vector.extract_strided_slice %18 {offsets = [0, 0], sizes = [2, 32], strides = [1, 1]} : vector<2x96xf32> to vector<2x32xf32>
    %23 = vector.extract_strided_slice %21 {offsets = [0, 0], sizes = [2, 32], strides = [1, 1]} : vector<2x96xf32> to vector<2x32xf32>
    %24 = arith.addf %22, %23 : vector<2x32xf32>
    %25 = arith.negf %24 : vector<2x32xf32>
    %26 = math.exp %25 : vector<2x32xf32>
    %cst_24 = arith.constant 1.000000e+00 : f32
    %27 = vector.broadcast %cst_24 : f32 to vector<2x32xf32>
    %28 = arith.addf %27, %26 : vector<2x32xf32>
    %29 = arith.divf %27, %28 : vector<2x32xf32>
    %30 = vector.extract_strided_slice %18 {offsets = [0, 32], sizes = [2, 32], strides = [1, 1]} : vector<2x96xf32> to vector<2x32xf32>
    %31 = vector.extract_strided_slice %21 {offsets = [0, 32], sizes = [2, 32], strides = [1, 1]} : vector<2x96xf32> to vector<2x32xf32>
    %32 = arith.addf %30, %31 : vector<2x32xf32>
    %33 = arith.negf %32 : vector<2x32xf32>
    %34 = math.exp %33 : vector<2x32xf32>
    %cst_25 = arith.constant 1.000000e+00 : f32
    %35 = vector.broadcast %cst_25 : f32 to vector<2x32xf32>
    %36 = arith.addf %35, %34 : vector<2x32xf32>
    %37 = arith.divf %35, %36 : vector<2x32xf32>
    %38 = vector.extract_strided_slice %18 {offsets = [0, 64], sizes = [2, 32], strides = [1, 1]} : vector<2x96xf32> to vector<2x32xf32>
    %39 = vector.extract_strided_slice %21 {offsets = [0, 64], sizes = [2, 32], strides = [1, 1]} : vector<2x96xf32> to vector<2x32xf32>
    %40 = arith.mulf %29, %39 : vector<2x32xf32>
    %41 = arith.addf %38, %40 : vector<2x32xf32>
    %42 = math.tanh %41 : vector<2x32xf32>
    %cst_26 = arith.constant 1.000000e+00 : f32
    %43 = vector.broadcast %cst_26 : f32 to vector<2x32xf32>
    %44 = arith.subf %43, %37 : vector<2x32xf32>
    %45 = arith.mulf %44, %42 : vector<2x32xf32>
    %46 = arith.mulf %37, %12 : vector<2x32xf32>
    %47 = arith.addf %45, %46 : vector<2x32xf32>
    %48 = arith.index_cast %c0_i32 : i32 to index
    %c0_27 = arith.constant 0 : index
    %c0_28 = arith.constant 0 : index
    %49 = vector.load %arg1[%48, %c0_27, %c0_28] : memref<8x2x32xf32, #tpu.memory_space<vmem>>, vector<1x2x32xf32>
    %50 = vector.shape_cast %49 : vector<1x2x32xf32> to vector<2x32xf32>
    %cst_29 = arith.constant dense<0.000000e+00> : vector<2x96xf32>
    %51 = tpu.matmul %50, %4, %cst_29 {dimension_numbers = #tpu.dot_dimension_numbers<[1], [0], [0], [1], [0, 0, 1, 1], [], []>} : vector<2x32xf32>, vector<32x96xf32>, vector<2x96xf32> -> vector<2x96xf32>
    %52 = vector.broadcast %6 : vector<1x96xf32> to vector<2x96xf32>
    %53 = arith.addf %51, %52 : vector<2x96xf32>
    %cst_30 = arith.constant dense<0.000000e+00> : vector<2x96xf32>
    %54 = tpu.matmul %12, %5, %cst_30 {dimension_numbers = #tpu.dot_dimension_numbers<[1], [0], [0], [1], [0, 0, 1, 1], [], []>} : vector<2x32xf32>, vector<32x96xf32>, vector<2x96xf32> -> vector<2x96xf32>
    %55 = vector.broadcast %7 : vector<1x96xf32> to vector<2x96xf32>
    %56 = arith.addf %54, %55 : vector<2x96xf32>
    %57 = vector.extract_strided_slice %53 {offsets = [0, 0], sizes = [2, 32], strides = [1, 1]} : vector<2x96xf32> to vector<2x32xf32>
    %58 = vector.extract_strided_slice %56 {offsets = [0, 0], sizes = [2, 32], strides = [1, 1]} : vector<2x96xf32> to vector<2x32xf32>
    %59 = arith.addf %57, %58 : vector<2x32xf32>
    %60 = arith.negf %59 : vector<2x32xf32>
    %61 = math.exp %60 : vector<2x32xf32>
    %cst_31 = arith.constant 1.000000e+00 : f32
    %62 = vector.broadcast %cst_31 : f32 to vector<2x32xf32>
    %63 = arith.addf %62, %61 : vector<2x32xf32>
    %64 = arith.divf %62, %63 : vector<2x32xf32>
    %65 = vector.extract_strided_slice %53 {offsets = [0, 32], sizes = [2, 32], strides = [1, 1]} : vector<2x96xf32> to vector<2x32xf32>
    %66 = vector.extract_strided_slice %56 {offsets = [0, 32], sizes = [2, 32], strides = [1, 1]} : vector<2x96xf32> to vector<2x32xf32>
    %67 = arith.addf %65, %66 : vector<2x32xf32>
    %68 = arith.negf %67 : vector<2x32xf32>
    %69 = math.exp %68 : vector<2x32xf32>
    %cst_32 = arith.constant 1.000000e+00 : f32
    %70 = vector.broadcast %cst_32 : f32 to vector<2x32xf32>
    %71 = arith.addf %70, %69 : vector<2x32xf32>
    %72 = arith.divf %70, %71 : vector<2x32xf32>
    %73 = vector.extract_strided_slice %53 {offsets = [0, 64], sizes = [2, 32], strides = [1, 1]} : vector<2x96xf32> to vector<2x32xf32>
    %74 = vector.extract_strided_slice %56 {offsets = [0, 64], sizes = [2, 32], strides = [1, 1]} : vector<2x96xf32> to vector<2x32xf32>
    %75 = arith.mulf %64, %74 : vector<2x32xf32>
    %76 = arith.addf %73, %75 : vector<2x32xf32>
    %77 = math.tanh %76 : vector<2x32xf32>
    %cst_33 = arith.constant 1.000000e+00 : f32
    %78 = vector.broadcast %cst_33 : f32 to vector<2x32xf32>
    %79 = arith.subf %78, %72 : vector<2x32xf32>
    %80 = arith.mulf %79, %77 : vector<2x32xf32>
    %81 = arith.mulf %72, %12 : vector<2x32xf32>
    %82 = arith.addf %80, %81 : vector<2x32xf32>
    %83 = vector.broadcast %c0_i32 : i32 to vector<2x1xi32>
    %84 = arith.cmpi slt, %83, %9 : vector<2x1xi32>
    %85 = vector.shape_cast %84 : vector<2x1xi1> to vector<2x1xi1>
    %86 = vector.broadcast %85 : vector<2x1xi1> to vector<2x32xi1>
    %87 = arith.select %86, %47, %12 : vector<2x32xi1>, vector<2x32xf32>
    %88 = vector.broadcast %c0_i32 : i32 to vector<2x1xi32>
    %89 = arith.cmpi slt, %88, %11 : vector<2x1xi32>
    %90 = vector.shape_cast %89 : vector<2x1xi1> to vector<2x1xi1>
    %91 = vector.broadcast %90 : vector<2x1xi1> to vector<2x32xi1>
    %92 = arith.select %91, %82, %12 : vector<2x32xi1>, vector<2x32xf32>
    %c1_i32 = arith.constant 1 : i32
    %93 = arith.index_cast %c1_i32 : i32 to index
    %c0_34 = arith.constant 0 : index
    %c0_35 = arith.constant 0 : index
    %94 = vector.load %arg0[%93, %c0_34, %c0_35] : memref<8x2x32xf32, #tpu.memory_space<vmem>>, vector<1x2x32xf32>
    %95 = vector.shape_cast %94 : vector<1x2x32xf32> to vector<2x32xf32>
    %cst_36 = arith.constant dense<0.000000e+00> : vector<2x96xf32>
    %96 = tpu.matmul %95, %0, %cst_36 {dimension_numbers = #tpu.dot_dimension_numbers<[1], [0], [0], [1], [0, 0, 1, 1], [], []>} : vector<2x32xf32>, vector<32x96xf32>, vector<2x96xf32> -> vector<2x96xf32>
    %97 = vector.broadcast %2 : vector<1x96xf32> to vector<2x96xf32>
    %98 = arith.addf %96, %97 : vector<2x96xf32>
    %cst_37 = arith.constant dense<0.000000e+00> : vector<2x96xf32>
    %99 = tpu.matmul %87, %1, %cst_37 {dimension_numbers = #tpu.dot_dimension_numbers<[1], [0], [0], [1], [0, 0, 1, 1], [], []>} : vector<2x32xf32>, vector<32x96xf32>, vector<2x96xf32> -> vector<2x96xf32>
    %100 = vector.broadcast %3 : vector<1x96xf32> to vector<2x96xf32>
    %101 = arith.addf %99, %100 : vector<2x96xf32>
    %102 = vector.extract_strided_slice %98 {offsets = [0, 0], sizes = [2, 32], strides = [1, 1]} : vector<2x96xf32> to vector<2x32xf32>
    %103 = vector.extract_strided_slice %101 {offsets = [0, 0], sizes = [2, 32], strides = [1, 1]} : vector<2x96xf32> to vector<2x32xf32>
    %104 = arith.addf %102, %103 : vector<2x32xf32>
    %105 = arith.negf %104 : vector<2x32xf32>
    %106 = math.exp %105 : vector<2x32xf32>
    %cst_38 = arith.constant 1.000000e+00 : f32
    %107 = vector.broadcast %cst_38 : f32 to vector<2x32xf32>
    %108 = arith.addf %107, %106 : vector<2x32xf32>
    %109 = arith.divf %107, %108 : vector<2x32xf32>
    %110 = vector.extract_strided_slice %98 {offsets = [0, 32], sizes = [2, 32], strides = [1, 1]} : vector<2x96xf32> to vector<2x32xf32>
    %111 = vector.extract_strided_slice %101 {offsets = [0, 32], sizes = [2, 32], strides = [1, 1]} : vector<2x96xf32> to vector<2x32xf32>
    %112 = arith.addf %110, %111 : vector<2x32xf32>
    %113 = arith.negf %112 : vector<2x32xf32>
    %114 = math.exp %113 : vector<2x32xf32>
    %cst_39 = arith.constant 1.000000e+00 : f32
    %115 = vector.broadcast %cst_39 : f32 to vector<2x32xf32>
    %116 = arith.addf %115, %114 : vector<2x32xf32>
    %117 = arith.divf %115, %116 : vector<2x32xf32>
    %118 = vector.extract_strided_slice %98 {offsets = [0, 64], sizes = [2, 32], strides = [1, 1]} : vector<2x96xf32> to vector<2x32xf32>
    %119 = vector.extract_strided_slice %101 {offsets = [0, 64], sizes = [2, 32], strides = [1, 1]} : vector<2x96xf32> to vector<2x32xf32>
    %120 = arith.mulf %109, %119 : vector<2x32xf32>
    %121 = arith.addf %118, %120 : vector<2x32xf32>
    %122 = math.tanh %121 : vector<2x32xf32>
    %cst_40 = arith.constant 1.000000e+00 : f32
    %123 = vector.broadcast %cst_40 : f32 to vector<2x32xf32>
    %124 = arith.subf %123, %117 : vector<2x32xf32>
    %125 = arith.mulf %124, %122 : vector<2x32xf32>
    %126 = arith.mulf %117, %87 : vector<2x32xf32>
    %127 = arith.addf %125, %126 : vector<2x32xf32>
    %128 = arith.index_cast %c1_i32 : i32 to index
    %c0_41 = arith.constant 0 : index
    %c0_42 = arith.constant 0 : index
    %129 = vector.load %arg1[%128, %c0_41, %c0_42] : memref<8x2x32xf32, #tpu.memory_space<vmem>>, vector<1x2x32xf32>
    %130 = vector.shape_cast %129 : vector<1x2x32xf32> to vector<2x32xf32>
    %cst_43 = arith.constant dense<0.000000e+00> : vector<2x96xf32>
    %131 = tpu.matmul %130, %4, %cst_43 {dimension_numbers = #tpu.dot_dimension_numbers<[1], [0], [0], [1], [0, 0, 1, 1], [], []>} : vector<2x32xf32>, vector<32x96xf32>, vector<2x96xf32> -> vector<2x96xf32>
    %132 = vector.broadcast %6 : vector<1x96xf32> to vector<2x96xf32>
    %133 = arith.addf %131, %132 : vector<2x96xf32>
    %cst_44 = arith.constant dense<0.000000e+00> : vector<2x96xf32>
    %134 = tpu.matmul %92, %5, %cst_44 {dimension_numbers = #tpu.dot_dimension_numbers<[1], [0], [0], [1], [0, 0, 1, 1], [], []>} : vector<2x32xf32>, vector<32x96xf32>, vector<2x96xf32> -> vector<2x96xf32>
    %135 = vector.broadcast %7 : vector<1x96xf32> to vector<2x96xf32>
    %136 = arith.addf %134, %135 : vector<2x96xf32>
    %137 = vector.extract_strided_slice %133 {offsets = [0, 0], sizes = [2, 32], strides = [1, 1]} : vector<2x96xf32> to vector<2x32xf32>
    %138 = vector.extract_strided_slice %136 {offsets = [0, 0], sizes = [2, 32], strides = [1, 1]} : vector<2x96xf32> to vector<2x32xf32>
    %139 = arith.addf %137, %138 : vector<2x32xf32>
    %140 = arith.negf %139 : vector<2x32xf32>
    %141 = math.exp %140 : vector<2x32xf32>
    %cst_45 = arith.constant 1.000000e+00 : f32
    %142 = vector.broadcast %cst_45 : f32 to vector<2x32xf32>
    %143 = arith.addf %142, %141 : vector<2x32xf32>
    %144 = arith.divf %142, %143 : vector<2x32xf32>
    %145 = vector.extract_strided_slice %133 {offsets = [0, 32], sizes = [2, 32], strides = [1, 1]} : vector<2x96xf32> to vector<2x32xf32>
    %146 = vector.extract_strided_slice %136 {offsets = [0, 32], sizes = [2, 32], strides = [1, 1]} : vector<2x96xf32> to vector<2x32xf32>
    %147 = arith.addf %145, %146 : vector<2x32xf32>
    %148 = arith.negf %147 : vector<2x32xf32>
    %149 = math.exp %148 : vector<2x32xf32>
    %cst_46 = arith.constant 1.000000e+00 : f32
    %150 = vector.broadcast %cst_46 : f32 to vector<2x32xf32>
    %151 = arith.addf %150, %149 : vector<2x32xf32>
    %152 = arith.divf %150, %151 : vector<2x32xf32>
    %153 = vector.extract_strided_slice %133 {offsets = [0, 64], sizes = [2, 32], strides = [1, 1]} : vector<2x96xf32> to vector<2x32xf32>
    %154 = vector.extract_strided_slice %136 {offsets = [0, 64], sizes = [2, 32], strides = [1, 1]} : vector<2x96xf32> to vector<2x32xf32>
    %155 = arith.mulf %144, %154 : vector<2x32xf32>
    %156 = arith.addf %153, %155 : vector<2x32xf32>
    %157 = math.tanh %156 : vector<2x32xf32>
    %cst_47 = arith.constant 1.000000e+00 : f32
    %158 = vector.broadcast %cst_47 : f32 to vector<2x32xf32>
    %159 = arith.subf %158, %152 : vector<2x32xf32>
    %160 = arith.mulf %159, %157 : vector<2x32xf32>
    %161 = arith.mulf %152, %92 : vector<2x32xf32>
    %162 = arith.addf %160, %161 : vector<2x32xf32>
    %163 = vector.broadcast %c1_i32 : i32 to vector<2x1xi32>
    %164 = arith.cmpi slt, %163, %9 : vector<2x1xi32>
    %165 = vector.shape_cast %164 : vector<2x1xi1> to vector<2x1xi1>
    %166 = vector.broadcast %165 : vector<2x1xi1> to vector<2x32xi1>
    %167 = arith.select %166, %127, %87 : vector<2x32xi1>, vector<2x32xf32>
    %168 = vector.broadcast %c1_i32 : i32 to vector<2x1xi32>
    %169 = arith.cmpi slt, %168, %11 : vector<2x1xi32>
    %170 = vector.shape_cast %169 : vector<2x1xi1> to vector<2x1xi1>
    %171 = vector.broadcast %170 : vector<2x1xi1> to vector<2x32xi1>
    %172 = arith.select %171, %162, %92 : vector<2x32xi1>, vector<2x32xf32>
    %c2_i32 = arith.constant 2 : i32
    %173 = arith.index_cast %c2_i32 : i32 to index
    %c0_48 = arith.constant 0 : index
    %c0_49 = arith.constant 0 : index
    %174 = vector.load %arg0[%173, %c0_48, %c0_49] : memref<8x2x32xf32, #tpu.memory_space<vmem>>, vector<1x2x32xf32>
    %175 = vector.shape_cast %174 : vector<1x2x32xf32> to vector<2x32xf32>
    %cst_50 = arith.constant dense<0.000000e+00> : vector<2x96xf32>
    %176 = tpu.matmul %175, %0, %cst_50 {dimension_numbers = #tpu.dot_dimension_numbers<[1], [0], [0], [1], [0, 0, 1, 1], [], []>} : vector<2x32xf32>, vector<32x96xf32>, vector<2x96xf32> -> vector<2x96xf32>
    %177 = vector.broadcast %2 : vector<1x96xf32> to vector<2x96xf32>
    %178 = arith.addf %176, %177 : vector<2x96xf32>
    %cst_51 = arith.constant dense<0.000000e+00> : vector<2x96xf32>
    %179 = tpu.matmul %167, %1, %cst_51 {dimension_numbers = #tpu.dot_dimension_numbers<[1], [0], [0], [1], [0, 0, 1, 1], [], []>} : vector<2x32xf32>, vector<32x96xf32>, vector<2x96xf32> -> vector<2x96xf32>
    %180 = vector.broadcast %3 : vector<1x96xf32> to vector<2x96xf32>
    %181 = arith.addf %179, %180 : vector<2x96xf32>
    %182 = vector.extract_strided_slice %178 {offsets = [0, 0], sizes = [2, 32], strides = [1, 1]} : vector<2x96xf32> to vector<2x32xf32>
    %183 = vector.extract_strided_slice %181 {offsets = [0, 0], sizes = [2, 32], strides = [1, 1]} : vector<2x96xf32> to vector<2x32xf32>
    %184 = arith.addf %182, %183 : vector<2x32xf32>
    %185 = arith.negf %184 : vector<2x32xf32>
    %186 = math.exp %185 : vector<2x32xf32>
    %cst_52 = arith.constant 1.000000e+00 : f32
    %187 = vector.broadcast %cst_52 : f32 to vector<2x32xf32>
    %188 = arith.addf %187, %186 : vector<2x32xf32>
    %189 = arith.divf %187, %188 : vector<2x32xf32>
    %190 = vector.extract_strided_slice %178 {offsets = [0, 32], sizes = [2, 32], strides = [1, 1]} : vector<2x96xf32> to vector<2x32xf32>
    %191 = vector.extract_strided_slice %181 {offsets = [0, 32], sizes = [2, 32], strides = [1, 1]} : vector<2x96xf32> to vector<2x32xf32>
    %192 = arith.addf %190, %191 : vector<2x32xf32>
    %193 = arith.negf %192 : vector<2x32xf32>
    %194 = math.exp %193 : vector<2x32xf32>
    %cst_53 = arith.constant 1.000000e+00 : f32
    %195 = vector.broadcast %cst_53 : f32 to vector<2x32xf32>
    %196 = arith.addf %195, %194 : vector<2x32xf32>
    %197 = arith.divf %195, %196 : vector<2x32xf32>
    %198 = vector.extract_strided_slice %178 {offsets = [0, 64], sizes = [2, 32], strides = [1, 1]} : vector<2x96xf32> to vector<2x32xf32>
    %199 = vector.extract_strided_slice %181 {offsets = [0, 64], sizes = [2, 32], strides = [1, 1]} : vector<2x96xf32> to vector<2x32xf32>
    %200 = arith.mulf %189, %199 : vector<2x32xf32>
    %201 = arith.addf %198, %200 : vector<2x32xf32>
    %202 = math.tanh %201 : vector<2x32xf32>
    %cst_54 = arith.constant 1.000000e+00 : f32
    %203 = vector.broadcast %cst_54 : f32 to vector<2x32xf32>
    %204 = arith.subf %203, %197 : vector<2x32xf32>
    %205 = arith.mulf %204, %202 : vector<2x32xf32>
    %206 = arith.mulf %197, %167 : vector<2x32xf32>
    %207 = arith.addf %205, %206 : vector<2x32xf32>
    %208 = arith.index_cast %c2_i32 : i32 to index
    %c0_55 = arith.constant 0 : index
    %c0_56 = arith.constant 0 : index
    %209 = vector.load %arg1[%208, %c0_55, %c0_56] : memref<8x2x32xf32, #tpu.memory_space<vmem>>, vector<1x2x32xf32>
    %210 = vector.shape_cast %209 : vector<1x2x32xf32> to vector<2x32xf32>
    %cst_57 = arith.constant dense<0.000000e+00> : vector<2x96xf32>
    %211 = tpu.matmul %210, %4, %cst_57 {dimension_numbers = #tpu.dot_dimension_numbers<[1], [0], [0], [1], [0, 0, 1, 1], [], []>} : vector<2x32xf32>, vector<32x96xf32>, vector<2x96xf32> -> vector<2x96xf32>
    %212 = vector.broadcast %6 : vector<1x96xf32> to vector<2x96xf32>
    %213 = arith.addf %211, %212 : vector<2x96xf32>
    %cst_58 = arith.constant dense<0.000000e+00> : vector<2x96xf32>
    %214 = tpu.matmul %172, %5, %cst_58 {dimension_numbers = #tpu.dot_dimension_numbers<[1], [0], [0], [1], [0, 0, 1, 1], [], []>} : vector<2x32xf32>, vector<32x96xf32>, vector<2x96xf32> -> vector<2x96xf32>
    %215 = vector.broadcast %7 : vector<1x96xf32> to vector<2x96xf32>
    %216 = arith.addf %214, %215 : vector<2x96xf32>
    %217 = vector.extract_strided_slice %213 {offsets = [0, 0], sizes = [2, 32], strides = [1, 1]} : vector<2x96xf32> to vector<2x32xf32>
    %218 = vector.extract_strided_slice %216 {offsets = [0, 0], sizes = [2, 32], strides = [1, 1]} : vector<2x96xf32> to vector<2x32xf32>
    %219 = arith.addf %217, %218 : vector<2x32xf32>
    %220 = arith.negf %219 : vector<2x32xf32>
    %221 = math.exp %220 : vector<2x32xf32>
    %cst_59 = arith.constant 1.000000e+00 : f32
    %222 = vector.broadcast %cst_59 : f32 to vector<2x32xf32>
    %223 = arith.addf %222, %221 : vector<2x32xf32>
    %224 = arith.divf %222, %223 : vector<2x32xf32>
    %225 = vector.extract_strided_slice %213 {offsets = [0, 32], sizes = [2, 32], strides = [1, 1]} : vector<2x96xf32> to vector<2x32xf32>
    %226 = vector.extract_strided_slice %216 {offsets = [0, 32], sizes = [2, 32], strides = [1, 1]} : vector<2x96xf32> to vector<2x32xf32>
    %227 = arith.addf %225, %226 : vector<2x32xf32>
    %228 = arith.negf %227 : vector<2x32xf32>
    %229 = math.exp %228 : vector<2x32xf32>
    %cst_60 = arith.constant 1.000000e+00 : f32
    %230 = vector.broadcast %cst_60 : f32 to vector<2x32xf32>
    %231 = arith.addf %230, %229 : vector<2x32xf32>
    %232 = arith.divf %230, %231 : vector<2x32xf32>
    %233 = vector.extract_strided_slice %213 {offsets = [0, 64], sizes = [2, 32], strides = [1, 1]} : vector<2x96xf32> to vector<2x32xf32>
    %234 = vector.extract_strided_slice %216 {offsets = [0, 64], sizes = [2, 32], strides = [1, 1]} : vector<2x96xf32> to vector<2x32xf32>
    %235 = arith.mulf %224, %234 : vector<2x32xf32>
    %236 = arith.addf %233, %235 : vector<2x32xf32>
    %237 = math.tanh %236 : vector<2x32xf32>
    %cst_61 = arith.constant 1.000000e+00 : f32
    %238 = vector.broadcast %cst_61 : f32 to vector<2x32xf32>
    %239 = arith.subf %238, %232 : vector<2x32xf32>
    %240 = arith.mulf %239, %237 : vector<2x32xf32>
    %241 = arith.mulf %232, %172 : vector<2x32xf32>
    %242 = arith.addf %240, %241 : vector<2x32xf32>
    %243 = vector.broadcast %c2_i32 : i32 to vector<2x1xi32>
    %244 = arith.cmpi slt, %243, %9 : vector<2x1xi32>
    %245 = vector.shape_cast %244 : vector<2x1xi1> to vector<2x1xi1>
    %246 = vector.broadcast %245 : vector<2x1xi1> to vector<2x32xi1>
    %247 = arith.select %246, %207, %167 : vector<2x32xi1>, vector<2x32xf32>
    %248 = vector.broadcast %c2_i32 : i32 to vector<2x1xi32>
    %249 = arith.cmpi slt, %248, %11 : vector<2x1xi32>
    %250 = vector.shape_cast %249 : vector<2x1xi1> to vector<2x1xi1>
    %251 = vector.broadcast %250 : vector<2x1xi1> to vector<2x32xi1>
    %252 = arith.select %251, %242, %172 : vector<2x32xi1>, vector<2x32xf32>
    %c3_i32 = arith.constant 3 : i32
    %253 = arith.index_cast %c3_i32 : i32 to index
    %c0_62 = arith.constant 0 : index
    %c0_63 = arith.constant 0 : index
    %254 = vector.load %arg0[%253, %c0_62, %c0_63] : memref<8x2x32xf32, #tpu.memory_space<vmem>>, vector<1x2x32xf32>
    %255 = vector.shape_cast %254 : vector<1x2x32xf32> to vector<2x32xf32>
    %cst_64 = arith.constant dense<0.000000e+00> : vector<2x96xf32>
    %256 = tpu.matmul %255, %0, %cst_64 {dimension_numbers = #tpu.dot_dimension_numbers<[1], [0], [0], [1], [0, 0, 1, 1], [], []>} : vector<2x32xf32>, vector<32x96xf32>, vector<2x96xf32> -> vector<2x96xf32>
    %257 = vector.broadcast %2 : vector<1x96xf32> to vector<2x96xf32>
    %258 = arith.addf %256, %257 : vector<2x96xf32>
    %cst_65 = arith.constant dense<0.000000e+00> : vector<2x96xf32>
    %259 = tpu.matmul %247, %1, %cst_65 {dimension_numbers = #tpu.dot_dimension_numbers<[1], [0], [0], [1], [0, 0, 1, 1], [], []>} : vector<2x32xf32>, vector<32x96xf32>, vector<2x96xf32> -> vector<2x96xf32>
    %260 = vector.broadcast %3 : vector<1x96xf32> to vector<2x96xf32>
    %261 = arith.addf %259, %260 : vector<2x96xf32>
    %262 = vector.extract_strided_slice %258 {offsets = [0, 0], sizes = [2, 32], strides = [1, 1]} : vector<2x96xf32> to vector<2x32xf32>
    %263 = vector.extract_strided_slice %261 {offsets = [0, 0], sizes = [2, 32], strides = [1, 1]} : vector<2x96xf32> to vector<2x32xf32>
    %264 = arith.addf %262, %263 : vector<2x32xf32>
    %265 = arith.negf %264 : vector<2x32xf32>
    %266 = math.exp %265 : vector<2x32xf32>
    %cst_66 = arith.constant 1.000000e+00 : f32
    %267 = vector.broadcast %cst_66 : f32 to vector<2x32xf32>
    %268 = arith.addf %267, %266 : vector<2x32xf32>
    %269 = arith.divf %267, %268 : vector<2x32xf32>
    %270 = vector.extract_strided_slice %258 {offsets = [0, 32], sizes = [2, 32], strides = [1, 1]} : vector<2x96xf32> to vector<2x32xf32>
    %271 = vector.extract_strided_slice %261 {offsets = [0, 32], sizes = [2, 32], strides = [1, 1]} : vector<2x96xf32> to vector<2x32xf32>
    %272 = arith.addf %270, %271 : vector<2x32xf32>
    %273 = arith.negf %272 : vector<2x32xf32>
    %274 = math.exp %273 : vector<2x32xf32>
    %cst_67 = arith.constant 1.000000e+00 : f32
    %275 = vector.broadcast %cst_67 : f32 to vector<2x32xf32>
    %276 = arith.addf %275, %274 : vector<2x32xf32>
    %277 = arith.divf %275, %276 : vector<2x32xf32>
    %278 = vector.extract_strided_slice %258 {offsets = [0, 64], sizes = [2, 32], strides = [1, 1]} : vector<2x96xf32> to vector<2x32xf32>
    %279 = vector.extract_strided_slice %261 {offsets = [0, 64], sizes = [2, 32], strides = [1, 1]} : vector<2x96xf32> to vector<2x32xf32>
    %280 = arith.mulf %269, %279 : vector<2x32xf32>
    %281 = arith.addf %278, %280 : vector<2x32xf32>
    %282 = math.tanh %281 : vector<2x32xf32>
    %cst_68 = arith.constant 1.000000e+00 : f32
    %283 = vector.broadcast %cst_68 : f32 to vector<2x32xf32>
    %284 = arith.subf %283, %277 : vector<2x32xf32>
    %285 = arith.mulf %284, %282 : vector<2x32xf32>
    %286 = arith.mulf %277, %247 : vector<2x32xf32>
    %287 = arith.addf %285, %286 : vector<2x32xf32>
    %288 = arith.index_cast %c3_i32 : i32 to index
    %c0_69 = arith.constant 0 : index
    %c0_70 = arith.constant 0 : index
    %289 = vector.load %arg1[%288, %c0_69, %c0_70] : memref<8x2x32xf32, #tpu.memory_space<vmem>>, vector<1x2x32xf32>
    %290 = vector.shape_cast %289 : vector<1x2x32xf32> to vector<2x32xf32>
    %cst_71 = arith.constant dense<0.000000e+00> : vector<2x96xf32>
    %291 = tpu.matmul %290, %4, %cst_71 {dimension_numbers = #tpu.dot_dimension_numbers<[1], [0], [0], [1], [0, 0, 1, 1], [], []>} : vector<2x32xf32>, vector<32x96xf32>, vector<2x96xf32> -> vector<2x96xf32>
    %292 = vector.broadcast %6 : vector<1x96xf32> to vector<2x96xf32>
    %293 = arith.addf %291, %292 : vector<2x96xf32>
    %cst_72 = arith.constant dense<0.000000e+00> : vector<2x96xf32>
    %294 = tpu.matmul %252, %5, %cst_72 {dimension_numbers = #tpu.dot_dimension_numbers<[1], [0], [0], [1], [0, 0, 1, 1], [], []>} : vector<2x32xf32>, vector<32x96xf32>, vector<2x96xf32> -> vector<2x96xf32>
    %295 = vector.broadcast %7 : vector<1x96xf32> to vector<2x96xf32>
    %296 = arith.addf %294, %295 : vector<2x96xf32>
    %297 = vector.extract_strided_slice %293 {offsets = [0, 0], sizes = [2, 32], strides = [1, 1]} : vector<2x96xf32> to vector<2x32xf32>
    %298 = vector.extract_strided_slice %296 {offsets = [0, 0], sizes = [2, 32], strides = [1, 1]} : vector<2x96xf32> to vector<2x32xf32>
    %299 = arith.addf %297, %298 : vector<2x32xf32>
    %300 = arith.negf %299 : vector<2x32xf32>
    %301 = math.exp %300 : vector<2x32xf32>
    %cst_73 = arith.constant 1.000000e+00 : f32
    %302 = vector.broadcast %cst_73 : f32 to vector<2x32xf32>
    %303 = arith.addf %302, %301 : vector<2x32xf32>
    %304 = arith.divf %302, %303 : vector<2x32xf32>
    %305 = vector.extract_strided_slice %293 {offsets = [0, 32], sizes = [2, 32], strides = [1, 1]} : vector<2x96xf32> to vector<2x32xf32>
    %306 = vector.extract_strided_slice %296 {offsets = [0, 32], sizes = [2, 32], strides = [1, 1]} : vector<2x96xf32> to vector<2x32xf32>
    %307 = arith.addf %305, %306 : vector<2x32xf32>
    %308 = arith.negf %307 : vector<2x32xf32>
    %309 = math.exp %308 : vector<2x32xf32>
    %cst_74 = arith.constant 1.000000e+00 : f32
    %310 = vector.broadcast %cst_74 : f32 to vector<2x32xf32>
    %311 = arith.addf %310, %309 : vector<2x32xf32>
    %312 = arith.divf %310, %311 : vector<2x32xf32>
    %313 = vector.extract_strided_slice %293 {offsets = [0, 64], sizes = [2, 32], strides = [1, 1]} : vector<2x96xf32> to vector<2x32xf32>
    %314 = vector.extract_strided_slice %296 {offsets = [0, 64], sizes = [2, 32], strides = [1, 1]} : vector<2x96xf32> to vector<2x32xf32>
    %315 = arith.mulf %304, %314 : vector<2x32xf32>
    %316 = arith.addf %313, %315 : vector<2x32xf32>
    %317 = math.tanh %316 : vector<2x32xf32>
    %cst_75 = arith.constant 1.000000e+00 : f32
    %318 = vector.broadcast %cst_75 : f32 to vector<2x32xf32>
    %319 = arith.subf %318, %312 : vector<2x32xf32>
    %320 = arith.mulf %319, %317 : vector<2x32xf32>
    %321 = arith.mulf %312, %252 : vector<2x32xf32>
    %322 = arith.addf %320, %321 : vector<2x32xf32>
    %323 = vector.broadcast %c3_i32 : i32 to vector<2x1xi32>
    %324 = arith.cmpi slt, %323, %9 : vector<2x1xi32>
    %325 = vector.shape_cast %324 : vector<2x1xi1> to vector<2x1xi1>
    %326 = vector.broadcast %325 : vector<2x1xi1> to vector<2x32xi1>
    %327 = arith.select %326, %287, %247 : vector<2x32xi1>, vector<2x32xf32>
    %328 = vector.broadcast %c3_i32 : i32 to vector<2x1xi32>
    %329 = arith.cmpi slt, %328, %11 : vector<2x1xi32>
    %330 = vector.shape_cast %329 : vector<2x1xi1> to vector<2x1xi1>
    %331 = vector.broadcast %330 : vector<2x1xi1> to vector<2x32xi1>
    %332 = arith.select %331, %322, %252 : vector<2x32xi1>, vector<2x32xf32>
    %c4_i32 = arith.constant 4 : i32
    %333 = arith.index_cast %c4_i32 : i32 to index
    %c0_76 = arith.constant 0 : index
    %c0_77 = arith.constant 0 : index
    %334 = vector.load %arg0[%333, %c0_76, %c0_77] : memref<8x2x32xf32, #tpu.memory_space<vmem>>, vector<1x2x32xf32>
    %335 = vector.shape_cast %334 : vector<1x2x32xf32> to vector<2x32xf32>
    %cst_78 = arith.constant dense<0.000000e+00> : vector<2x96xf32>
    %336 = tpu.matmul %335, %0, %cst_78 {dimension_numbers = #tpu.dot_dimension_numbers<[1], [0], [0], [1], [0, 0, 1, 1], [], []>} : vector<2x32xf32>, vector<32x96xf32>, vector<2x96xf32> -> vector<2x96xf32>
    %337 = vector.broadcast %2 : vector<1x96xf32> to vector<2x96xf32>
    %338 = arith.addf %336, %337 : vector<2x96xf32>
    %cst_79 = arith.constant dense<0.000000e+00> : vector<2x96xf32>
    %339 = tpu.matmul %327, %1, %cst_79 {dimension_numbers = #tpu.dot_dimension_numbers<[1], [0], [0], [1], [0, 0, 1, 1], [], []>} : vector<2x32xf32>, vector<32x96xf32>, vector<2x96xf32> -> vector<2x96xf32>
    %340 = vector.broadcast %3 : vector<1x96xf32> to vector<2x96xf32>
    %341 = arith.addf %339, %340 : vector<2x96xf32>
    %342 = vector.extract_strided_slice %338 {offsets = [0, 0], sizes = [2, 32], strides = [1, 1]} : vector<2x96xf32> to vector<2x32xf32>
    %343 = vector.extract_strided_slice %341 {offsets = [0, 0], sizes = [2, 32], strides = [1, 1]} : vector<2x96xf32> to vector<2x32xf32>
    %344 = arith.addf %342, %343 : vector<2x32xf32>
    %345 = arith.negf %344 : vector<2x32xf32>
    %346 = math.exp %345 : vector<2x32xf32>
    %cst_80 = arith.constant 1.000000e+00 : f32
    %347 = vector.broadcast %cst_80 : f32 to vector<2x32xf32>
    %348 = arith.addf %347, %346 : vector<2x32xf32>
    %349 = arith.divf %347, %348 : vector<2x32xf32>
    %350 = vector.extract_strided_slice %338 {offsets = [0, 32], sizes = [2, 32], strides = [1, 1]} : vector<2x96xf32> to vector<2x32xf32>
    %351 = vector.extract_strided_slice %341 {offsets = [0, 32], sizes = [2, 32], strides = [1, 1]} : vector<2x96xf32> to vector<2x32xf32>
    %352 = arith.addf %350, %351 : vector<2x32xf32>
    %353 = arith.negf %352 : vector<2x32xf32>
    %354 = math.exp %353 : vector<2x32xf32>
    %cst_81 = arith.constant 1.000000e+00 : f32
    %355 = vector.broadcast %cst_81 : f32 to vector<2x32xf32>
    %356 = arith.addf %355, %354 : vector<2x32xf32>
    %357 = arith.divf %355, %356 : vector<2x32xf32>
    %358 = vector.extract_strided_slice %338 {offsets = [0, 64], sizes = [2, 32], strides = [1, 1]} : vector<2x96xf32> to vector<2x32xf32>
    %359 = vector.extract_strided_slice %341 {offsets = [0, 64], sizes = [2, 32], strides = [1, 1]} : vector<2x96xf32> to vector<2x32xf32>
    %360 = arith.mulf %349, %359 : vector<2x32xf32>
    %361 = arith.addf %358, %360 : vector<2x32xf32>
    %362 = math.tanh %361 : vector<2x32xf32>
    %cst_82 = arith.constant 1.000000e+00 : f32
    %363 = vector.broadcast %cst_82 : f32 to vector<2x32xf32>
    %364 = arith.subf %363, %357 : vector<2x32xf32>
    %365 = arith.mulf %364, %362 : vector<2x32xf32>
    %366 = arith.mulf %357, %327 : vector<2x32xf32>
    %367 = arith.addf %365, %366 : vector<2x32xf32>
    %368 = arith.index_cast %c4_i32 : i32 to index
    %c0_83 = arith.constant 0 : index
    %c0_84 = arith.constant 0 : index
    %369 = vector.load %arg1[%368, %c0_83, %c0_84] : memref<8x2x32xf32, #tpu.memory_space<vmem>>, vector<1x2x32xf32>
    %370 = vector.shape_cast %369 : vector<1x2x32xf32> to vector<2x32xf32>
    %cst_85 = arith.constant dense<0.000000e+00> : vector<2x96xf32>
    %371 = tpu.matmul %370, %4, %cst_85 {dimension_numbers = #tpu.dot_dimension_numbers<[1], [0], [0], [1], [0, 0, 1, 1], [], []>} : vector<2x32xf32>, vector<32x96xf32>, vector<2x96xf32> -> vector<2x96xf32>
    %372 = vector.broadcast %6 : vector<1x96xf32> to vector<2x96xf32>
    %373 = arith.addf %371, %372 : vector<2x96xf32>
    %cst_86 = arith.constant dense<0.000000e+00> : vector<2x96xf32>
    %374 = tpu.matmul %332, %5, %cst_86 {dimension_numbers = #tpu.dot_dimension_numbers<[1], [0], [0], [1], [0, 0, 1, 1], [], []>} : vector<2x32xf32>, vector<32x96xf32>, vector<2x96xf32> -> vector<2x96xf32>
    %375 = vector.broadcast %7 : vector<1x96xf32> to vector<2x96xf32>
    %376 = arith.addf %374, %375 : vector<2x96xf32>
    %377 = vector.extract_strided_slice %373 {offsets = [0, 0], sizes = [2, 32], strides = [1, 1]} : vector<2x96xf32> to vector<2x32xf32>
    %378 = vector.extract_strided_slice %376 {offsets = [0, 0], sizes = [2, 32], strides = [1, 1]} : vector<2x96xf32> to vector<2x32xf32>
    %379 = arith.addf %377, %378 : vector<2x32xf32>
    %380 = arith.negf %379 : vector<2x32xf32>
    %381 = math.exp %380 : vector<2x32xf32>
    %cst_87 = arith.constant 1.000000e+00 : f32
    %382 = vector.broadcast %cst_87 : f32 to vector<2x32xf32>
    %383 = arith.addf %382, %381 : vector<2x32xf32>
    %384 = arith.divf %382, %383 : vector<2x32xf32>
    %385 = vector.extract_strided_slice %373 {offsets = [0, 32], sizes = [2, 32], strides = [1, 1]} : vector<2x96xf32> to vector<2x32xf32>
    %386 = vector.extract_strided_slice %376 {offsets = [0, 32], sizes = [2, 32], strides = [1, 1]} : vector<2x96xf32> to vector<2x32xf32>
    %387 = arith.addf %385, %386 : vector<2x32xf32>
    %388 = arith.negf %387 : vector<2x32xf32>
    %389 = math.exp %388 : vector<2x32xf32>
    %cst_88 = arith.constant 1.000000e+00 : f32
    %390 = vector.broadcast %cst_88 : f32 to vector<2x32xf32>
    %391 = arith.addf %390, %389 : vector<2x32xf32>
    %392 = arith.divf %390, %391 : vector<2x32xf32>
    %393 = vector.extract_strided_slice %373 {offsets = [0, 64], sizes = [2, 32], strides = [1, 1]} : vector<2x96xf32> to vector<2x32xf32>
    %394 = vector.extract_strided_slice %376 {offsets = [0, 64], sizes = [2, 32], strides = [1, 1]} : vector<2x96xf32> to vector<2x32xf32>
    %395 = arith.mulf %384, %394 : vector<2x32xf32>
    %396 = arith.addf %393, %395 : vector<2x32xf32>
    %397 = math.tanh %396 : vector<2x32xf32>
    %cst_89 = arith.constant 1.000000e+00 : f32
    %398 = vector.broadcast %cst_89 : f32 to vector<2x32xf32>
    %399 = arith.subf %398, %392 : vector<2x32xf32>
    %400 = arith.mulf %399, %397 : vector<2x32xf32>
    %401 = arith.mulf %392, %332 : vector<2x32xf32>
    %402 = arith.addf %400, %401 : vector<2x32xf32>
    %403 = vector.broadcast %c4_i32 : i32 to vector<2x1xi32>
    %404 = arith.cmpi slt, %403, %9 : vector<2x1xi32>
    %405 = vector.shape_cast %404 : vector<2x1xi1> to vector<2x1xi1>
    %406 = vector.broadcast %405 : vector<2x1xi1> to vector<2x32xi1>
    %407 = arith.select %406, %367, %327 : vector<2x32xi1>, vector<2x32xf32>
    %408 = vector.broadcast %c4_i32 : i32 to vector<2x1xi32>
    %409 = arith.cmpi slt, %408, %11 : vector<2x1xi32>
    %410 = vector.shape_cast %409 : vector<2x1xi1> to vector<2x1xi1>
    %411 = vector.broadcast %410 : vector<2x1xi1> to vector<2x32xi1>
    %412 = arith.select %411, %402, %332 : vector<2x32xi1>, vector<2x32xf32>
    %c5_i32 = arith.constant 5 : i32
    %413 = arith.index_cast %c5_i32 : i32 to index
    %c0_90 = arith.constant 0 : index
    %c0_91 = arith.constant 0 : index
    %414 = vector.load %arg0[%413, %c0_90, %c0_91] : memref<8x2x32xf32, #tpu.memory_space<vmem>>, vector<1x2x32xf32>
    %415 = vector.shape_cast %414 : vector<1x2x32xf32> to vector<2x32xf32>
    %cst_92 = arith.constant dense<0.000000e+00> : vector<2x96xf32>
    %416 = tpu.matmul %415, %0, %cst_92 {dimension_numbers = #tpu.dot_dimension_numbers<[1], [0], [0], [1], [0, 0, 1, 1], [], []>} : vector<2x32xf32>, vector<32x96xf32>, vector<2x96xf32> -> vector<2x96xf32>
    %417 = vector.broadcast %2 : vector<1x96xf32> to vector<2x96xf32>
    %418 = arith.addf %416, %417 : vector<2x96xf32>
    %cst_93 = arith.constant dense<0.000000e+00> : vector<2x96xf32>
    %419 = tpu.matmul %407, %1, %cst_93 {dimension_numbers = #tpu.dot_dimension_numbers<[1], [0], [0], [1], [0, 0, 1, 1], [], []>} : vector<2x32xf32>, vector<32x96xf32>, vector<2x96xf32> -> vector<2x96xf32>
    %420 = vector.broadcast %3 : vector<1x96xf32> to vector<2x96xf32>
    %421 = arith.addf %419, %420 : vector<2x96xf32>
    %422 = vector.extract_strided_slice %418 {offsets = [0, 0], sizes = [2, 32], strides = [1, 1]} : vector<2x96xf32> to vector<2x32xf32>
    %423 = vector.extract_strided_slice %421 {offsets = [0, 0], sizes = [2, 32], strides = [1, 1]} : vector<2x96xf32> to vector<2x32xf32>
    %424 = arith.addf %422, %423 : vector<2x32xf32>
    %425 = arith.negf %424 : vector<2x32xf32>
    %426 = math.exp %425 : vector<2x32xf32>
    %cst_94 = arith.constant 1.000000e+00 : f32
    %427 = vector.broadcast %cst_94 : f32 to vector<2x32xf32>
    %428 = arith.addf %427, %426 : vector<2x32xf32>
    %429 = arith.divf %427, %428 : vector<2x32xf32>
    %430 = vector.extract_strided_slice %418 {offsets = [0, 32], sizes = [2, 32], strides = [1, 1]} : vector<2x96xf32> to vector<2x32xf32>
    %431 = vector.extract_strided_slice %421 {offsets = [0, 32], sizes = [2, 32], strides = [1, 1]} : vector<2x96xf32> to vector<2x32xf32>
    %432 = arith.addf %430, %431 : vector<2x32xf32>
    %433 = arith.negf %432 : vector<2x32xf32>
    %434 = math.exp %433 : vector<2x32xf32>
    %cst_95 = arith.constant 1.000000e+00 : f32
    %435 = vector.broadcast %cst_95 : f32 to vector<2x32xf32>
    %436 = arith.addf %435, %434 : vector<2x32xf32>
    %437 = arith.divf %435, %436 : vector<2x32xf32>
    %438 = vector.extract_strided_slice %418 {offsets = [0, 64], sizes = [2, 32], strides = [1, 1]} : vector<2x96xf32> to vector<2x32xf32>
    %439 = vector.extract_strided_slice %421 {offsets = [0, 64], sizes = [2, 32], strides = [1, 1]} : vector<2x96xf32> to vector<2x32xf32>
    %440 = arith.mulf %429, %439 : vector<2x32xf32>
    %441 = arith.addf %438, %440 : vector<2x32xf32>
    %442 = math.tanh %441 : vector<2x32xf32>
    %cst_96 = arith.constant 1.000000e+00 : f32
    %443 = vector.broadcast %cst_96 : f32 to vector<2x32xf32>
    %444 = arith.subf %443, %437 : vector<2x32xf32>
    %445 = arith.mulf %444, %442 : vector<2x32xf32>
    %446 = arith.mulf %437, %407 : vector<2x32xf32>
    %447 = arith.addf %445, %446 : vector<2x32xf32>
    %448 = arith.index_cast %c5_i32 : i32 to index
    %c0_97 = arith.constant 0 : index
    %c0_98 = arith.constant 0 : index
    %449 = vector.load %arg1[%448, %c0_97, %c0_98] : memref<8x2x32xf32, #tpu.memory_space<vmem>>, vector<1x2x32xf32>
    %450 = vector.shape_cast %449 : vector<1x2x32xf32> to vector<2x32xf32>
    %cst_99 = arith.constant dense<0.000000e+00> : vector<2x96xf32>
    %451 = tpu.matmul %450, %4, %cst_99 {dimension_numbers = #tpu.dot_dimension_numbers<[1], [0], [0], [1], [0, 0, 1, 1], [], []>} : vector<2x32xf32>, vector<32x96xf32>, vector<2x96xf32> -> vector<2x96xf32>
    %452 = vector.broadcast %6 : vector<1x96xf32> to vector<2x96xf32>
    %453 = arith.addf %451, %452 : vector<2x96xf32>
    %cst_100 = arith.constant dense<0.000000e+00> : vector<2x96xf32>
    %454 = tpu.matmul %412, %5, %cst_100 {dimension_numbers = #tpu.dot_dimension_numbers<[1], [0], [0], [1], [0, 0, 1, 1], [], []>} : vector<2x32xf32>, vector<32x96xf32>, vector<2x96xf32> -> vector<2x96xf32>
    %455 = vector.broadcast %7 : vector<1x96xf32> to vector<2x96xf32>
    %456 = arith.addf %454, %455 : vector<2x96xf32>
    %457 = vector.extract_strided_slice %453 {offsets = [0, 0], sizes = [2, 32], strides = [1, 1]} : vector<2x96xf32> to vector<2x32xf32>
    %458 = vector.extract_strided_slice %456 {offsets = [0, 0], sizes = [2, 32], strides = [1, 1]} : vector<2x96xf32> to vector<2x32xf32>
    %459 = arith.addf %457, %458 : vector<2x32xf32>
    %460 = arith.negf %459 : vector<2x32xf32>
    %461 = math.exp %460 : vector<2x32xf32>
    %cst_101 = arith.constant 1.000000e+00 : f32
    %462 = vector.broadcast %cst_101 : f32 to vector<2x32xf32>
    %463 = arith.addf %462, %461 : vector<2x32xf32>
    %464 = arith.divf %462, %463 : vector<2x32xf32>
    %465 = vector.extract_strided_slice %453 {offsets = [0, 32], sizes = [2, 32], strides = [1, 1]} : vector<2x96xf32> to vector<2x32xf32>
    %466 = vector.extract_strided_slice %456 {offsets = [0, 32], sizes = [2, 32], strides = [1, 1]} : vector<2x96xf32> to vector<2x32xf32>
    %467 = arith.addf %465, %466 : vector<2x32xf32>
    %468 = arith.negf %467 : vector<2x32xf32>
    %469 = math.exp %468 : vector<2x32xf32>
    %cst_102 = arith.constant 1.000000e+00 : f32
    %470 = vector.broadcast %cst_102 : f32 to vector<2x32xf32>
    %471 = arith.addf %470, %469 : vector<2x32xf32>
    %472 = arith.divf %470, %471 : vector<2x32xf32>
    %473 = vector.extract_strided_slice %453 {offsets = [0, 64], sizes = [2, 32], strides = [1, 1]} : vector<2x96xf32> to vector<2x32xf32>
    %474 = vector.extract_strided_slice %456 {offsets = [0, 64], sizes = [2, 32], strides = [1, 1]} : vector<2x96xf32> to vector<2x32xf32>
    %475 = arith.mulf %464, %474 : vector<2x32xf32>
    %476 = arith.addf %473, %475 : vector<2x32xf32>
    %477 = math.tanh %476 : vector<2x32xf32>
    %cst_103 = arith.constant 1.000000e+00 : f32
    %478 = vector.broadcast %cst_103 : f32 to vector<2x32xf32>
    %479 = arith.subf %478, %472 : vector<2x32xf32>
    %480 = arith.mulf %479, %477 : vector<2x32xf32>
    %481 = arith.mulf %472, %412 : vector<2x32xf32>
    %482 = arith.addf %480, %481 : vector<2x32xf32>
    %483 = vector.broadcast %c5_i32 : i32 to vector<2x1xi32>
    %484 = arith.cmpi slt, %483, %9 : vector<2x1xi32>
    %485 = vector.shape_cast %484 : vector<2x1xi1> to vector<2x1xi1>
    %486 = vector.broadcast %485 : vector<2x1xi1> to vector<2x32xi1>
    %487 = arith.select %486, %447, %407 : vector<2x32xi1>, vector<2x32xf32>
    %488 = vector.broadcast %c5_i32 : i32 to vector<2x1xi32>
    %489 = arith.cmpi slt, %488, %11 : vector<2x1xi32>
    %490 = vector.shape_cast %489 : vector<2x1xi1> to vector<2x1xi1>
    %491 = vector.broadcast %490 : vector<2x1xi1> to vector<2x32xi1>
    %492 = arith.select %491, %482, %412 : vector<2x32xi1>, vector<2x32xf32>
    %c6_i32 = arith.constant 6 : i32
    %493 = arith.index_cast %c6_i32 : i32 to index
    %c0_104 = arith.constant 0 : index
    %c0_105 = arith.constant 0 : index
    %494 = vector.load %arg0[%493, %c0_104, %c0_105] : memref<8x2x32xf32, #tpu.memory_space<vmem>>, vector<1x2x32xf32>
    %495 = vector.shape_cast %494 : vector<1x2x32xf32> to vector<2x32xf32>
    %cst_106 = arith.constant dense<0.000000e+00> : vector<2x96xf32>
    %496 = tpu.matmul %495, %0, %cst_106 {dimension_numbers = #tpu.dot_dimension_numbers<[1], [0], [0], [1], [0, 0, 1, 1], [], []>} : vector<2x32xf32>, vector<32x96xf32>, vector<2x96xf32> -> vector<2x96xf32>
    %497 = vector.broadcast %2 : vector<1x96xf32> to vector<2x96xf32>
    %498 = arith.addf %496, %497 : vector<2x96xf32>
    %cst_107 = arith.constant dense<0.000000e+00> : vector<2x96xf32>
    %499 = tpu.matmul %487, %1, %cst_107 {dimension_numbers = #tpu.dot_dimension_numbers<[1], [0], [0], [1], [0, 0, 1, 1], [], []>} : vector<2x32xf32>, vector<32x96xf32>, vector<2x96xf32> -> vector<2x96xf32>
    %500 = vector.broadcast %3 : vector<1x96xf32> to vector<2x96xf32>
    %501 = arith.addf %499, %500 : vector<2x96xf32>
    %502 = vector.extract_strided_slice %498 {offsets = [0, 0], sizes = [2, 32], strides = [1, 1]} : vector<2x96xf32> to vector<2x32xf32>
    %503 = vector.extract_strided_slice %501 {offsets = [0, 0], sizes = [2, 32], strides = [1, 1]} : vector<2x96xf32> to vector<2x32xf32>
    %504 = arith.addf %502, %503 : vector<2x32xf32>
    %505 = arith.negf %504 : vector<2x32xf32>
    %506 = math.exp %505 : vector<2x32xf32>
    %cst_108 = arith.constant 1.000000e+00 : f32
    %507 = vector.broadcast %cst_108 : f32 to vector<2x32xf32>
    %508 = arith.addf %507, %506 : vector<2x32xf32>
    %509 = arith.divf %507, %508 : vector<2x32xf32>
    %510 = vector.extract_strided_slice %498 {offsets = [0, 32], sizes = [2, 32], strides = [1, 1]} : vector<2x96xf32> to vector<2x32xf32>
    %511 = vector.extract_strided_slice %501 {offsets = [0, 32], sizes = [2, 32], strides = [1, 1]} : vector<2x96xf32> to vector<2x32xf32>
    %512 = arith.addf %510, %511 : vector<2x32xf32>
    %513 = arith.negf %512 : vector<2x32xf32>
    %514 = math.exp %513 : vector<2x32xf32>
    %cst_109 = arith.constant 1.000000e+00 : f32
    %515 = vector.broadcast %cst_109 : f32 to vector<2x32xf32>
    %516 = arith.addf %515, %514 : vector<2x32xf32>
    %517 = arith.divf %515, %516 : vector<2x32xf32>
    %518 = vector.extract_strided_slice %498 {offsets = [0, 64], sizes = [2, 32], strides = [1, 1]} : vector<2x96xf32> to vector<2x32xf32>
    %519 = vector.extract_strided_slice %501 {offsets = [0, 64], sizes = [2, 32], strides = [1, 1]} : vector<2x96xf32> to vector<2x32xf32>
    %520 = arith.mulf %509, %519 : vector<2x32xf32>
    %521 = arith.addf %518, %520 : vector<2x32xf32>
    %522 = math.tanh %521 : vector<2x32xf32>
    %cst_110 = arith.constant 1.000000e+00 : f32
    %523 = vector.broadcast %cst_110 : f32 to vector<2x32xf32>
    %524 = arith.subf %523, %517 : vector<2x32xf32>
    %525 = arith.mulf %524, %522 : vector<2x32xf32>
    %526 = arith.mulf %517, %487 : vector<2x32xf32>
    %527 = arith.addf %525, %526 : vector<2x32xf32>
    %528 = arith.index_cast %c6_i32 : i32 to index
    %c0_111 = arith.constant 0 : index
    %c0_112 = arith.constant 0 : index
    %529 = vector.load %arg1[%528, %c0_111, %c0_112] : memref<8x2x32xf32, #tpu.memory_space<vmem>>, vector<1x2x32xf32>
    %530 = vector.shape_cast %529 : vector<1x2x32xf32> to vector<2x32xf32>
    %cst_113 = arith.constant dense<0.000000e+00> : vector<2x96xf32>
    %531 = tpu.matmul %530, %4, %cst_113 {dimension_numbers = #tpu.dot_dimension_numbers<[1], [0], [0], [1], [0, 0, 1, 1], [], []>} : vector<2x32xf32>, vector<32x96xf32>, vector<2x96xf32> -> vector<2x96xf32>
    %532 = vector.broadcast %6 : vector<1x96xf32> to vector<2x96xf32>
    %533 = arith.addf %531, %532 : vector<2x96xf32>
    %cst_114 = arith.constant dense<0.000000e+00> : vector<2x96xf32>
    %534 = tpu.matmul %492, %5, %cst_114 {dimension_numbers = #tpu.dot_dimension_numbers<[1], [0], [0], [1], [0, 0, 1, 1], [], []>} : vector<2x32xf32>, vector<32x96xf32>, vector<2x96xf32> -> vector<2x96xf32>
    %535 = vector.broadcast %7 : vector<1x96xf32> to vector<2x96xf32>
    %536 = arith.addf %534, %535 : vector<2x96xf32>
    %537 = vector.extract_strided_slice %533 {offsets = [0, 0], sizes = [2, 32], strides = [1, 1]} : vector<2x96xf32> to vector<2x32xf32>
    %538 = vector.extract_strided_slice %536 {offsets = [0, 0], sizes = [2, 32], strides = [1, 1]} : vector<2x96xf32> to vector<2x32xf32>
    %539 = arith.addf %537, %538 : vector<2x32xf32>
    %540 = arith.negf %539 : vector<2x32xf32>
    %541 = math.exp %540 : vector<2x32xf32>
    %cst_115 = arith.constant 1.000000e+00 : f32
    %542 = vector.broadcast %cst_115 : f32 to vector<2x32xf32>
    %543 = arith.addf %542, %541 : vector<2x32xf32>
    %544 = arith.divf %542, %543 : vector<2x32xf32>
    %545 = vector.extract_strided_slice %533 {offsets = [0, 32], sizes = [2, 32], strides = [1, 1]} : vector<2x96xf32> to vector<2x32xf32>
    %546 = vector.extract_strided_slice %536 {offsets = [0, 32], sizes = [2, 32], strides = [1, 1]} : vector<2x96xf32> to vector<2x32xf32>
    %547 = arith.addf %545, %546 : vector<2x32xf32>
    %548 = arith.negf %547 : vector<2x32xf32>
    %549 = math.exp %548 : vector<2x32xf32>
    %cst_116 = arith.constant 1.000000e+00 : f32
    %550 = vector.broadcast %cst_116 : f32 to vector<2x32xf32>
    %551 = arith.addf %550, %549 : vector<2x32xf32>
    %552 = arith.divf %550, %551 : vector<2x32xf32>
    %553 = vector.extract_strided_slice %533 {offsets = [0, 64], sizes = [2, 32], strides = [1, 1]} : vector<2x96xf32> to vector<2x32xf32>
    %554 = vector.extract_strided_slice %536 {offsets = [0, 64], sizes = [2, 32], strides = [1, 1]} : vector<2x96xf32> to vector<2x32xf32>
    %555 = arith.mulf %544, %554 : vector<2x32xf32>
    %556 = arith.addf %553, %555 : vector<2x32xf32>
    %557 = math.tanh %556 : vector<2x32xf32>
    %cst_117 = arith.constant 1.000000e+00 : f32
    %558 = vector.broadcast %cst_117 : f32 to vector<2x32xf32>
    %559 = arith.subf %558, %552 : vector<2x32xf32>
    %560 = arith.mulf %559, %557 : vector<2x32xf32>
    %561 = arith.mulf %552, %492 : vector<2x32xf32>
    %562 = arith.addf %560, %561 : vector<2x32xf32>
    %563 = vector.broadcast %c6_i32 : i32 to vector<2x1xi32>
    %564 = arith.cmpi slt, %563, %9 : vector<2x1xi32>
    %565 = vector.shape_cast %564 : vector<2x1xi1> to vector<2x1xi1>
    %566 = vector.broadcast %565 : vector<2x1xi1> to vector<2x32xi1>
    %567 = arith.select %566, %527, %487 : vector<2x32xi1>, vector<2x32xf32>
    %568 = vector.broadcast %c6_i32 : i32 to vector<2x1xi32>
    %569 = arith.cmpi slt, %568, %11 : vector<2x1xi32>
    %570 = vector.shape_cast %569 : vector<2x1xi1> to vector<2x1xi1>
    %571 = vector.broadcast %570 : vector<2x1xi1> to vector<2x32xi1>
    %572 = arith.select %571, %562, %492 : vector<2x32xi1>, vector<2x32xf32>
    %c7_i32 = arith.constant 7 : i32
    %573 = arith.index_cast %c7_i32 : i32 to index
    %c0_118 = arith.constant 0 : index
    %c0_119 = arith.constant 0 : index
    %574 = vector.load %arg0[%573, %c0_118, %c0_119] : memref<8x2x32xf32, #tpu.memory_space<vmem>>, vector<1x2x32xf32>
    %575 = vector.shape_cast %574 : vector<1x2x32xf32> to vector<2x32xf32>
    %cst_120 = arith.constant dense<0.000000e+00> : vector<2x96xf32>
    %576 = tpu.matmul %575, %0, %cst_120 {dimension_numbers = #tpu.dot_dimension_numbers<[1], [0], [0], [1], [0, 0, 1, 1], [], []>} : vector<2x32xf32>, vector<32x96xf32>, vector<2x96xf32> -> vector<2x96xf32>
    %577 = vector.broadcast %2 : vector<1x96xf32> to vector<2x96xf32>
    %578 = arith.addf %576, %577 : vector<2x96xf32>
    %cst_121 = arith.constant dense<0.000000e+00> : vector<2x96xf32>
    %579 = tpu.matmul %567, %1, %cst_121 {dimension_numbers = #tpu.dot_dimension_numbers<[1], [0], [0], [1], [0, 0, 1, 1], [], []>} : vector<2x32xf32>, vector<32x96xf32>, vector<2x96xf32> -> vector<2x96xf32>
    %580 = vector.broadcast %3 : vector<1x96xf32> to vector<2x96xf32>
    %581 = arith.addf %579, %580 : vector<2x96xf32>
    %582 = vector.extract_strided_slice %578 {offsets = [0, 0], sizes = [2, 32], strides = [1, 1]} : vector<2x96xf32> to vector<2x32xf32>
    %583 = vector.extract_strided_slice %581 {offsets = [0, 0], sizes = [2, 32], strides = [1, 1]} : vector<2x96xf32> to vector<2x32xf32>
    %584 = arith.addf %582, %583 : vector<2x32xf32>
    %585 = arith.negf %584 : vector<2x32xf32>
    %586 = math.exp %585 : vector<2x32xf32>
    %cst_122 = arith.constant 1.000000e+00 : f32
    %587 = vector.broadcast %cst_122 : f32 to vector<2x32xf32>
    %588 = arith.addf %587, %586 : vector<2x32xf32>
    %589 = arith.divf %587, %588 : vector<2x32xf32>
    %590 = vector.extract_strided_slice %578 {offsets = [0, 32], sizes = [2, 32], strides = [1, 1]} : vector<2x96xf32> to vector<2x32xf32>
    %591 = vector.extract_strided_slice %581 {offsets = [0, 32], sizes = [2, 32], strides = [1, 1]} : vector<2x96xf32> to vector<2x32xf32>
    %592 = arith.addf %590, %591 : vector<2x32xf32>
    %593 = arith.negf %592 : vector<2x32xf32>
    %594 = math.exp %593 : vector<2x32xf32>
    %cst_123 = arith.constant 1.000000e+00 : f32
    %595 = vector.broadcast %cst_123 : f32 to vector<2x32xf32>
    %596 = arith.addf %595, %594 : vector<2x32xf32>
    %597 = arith.divf %595, %596 : vector<2x32xf32>
    %598 = vector.extract_strided_slice %578 {offsets = [0, 64], sizes = [2, 32], strides = [1, 1]} : vector<2x96xf32> to vector<2x32xf32>
    %599 = vector.extract_strided_slice %581 {offsets = [0, 64], sizes = [2, 32], strides = [1, 1]} : vector<2x96xf32> to vector<2x32xf32>
    %600 = arith.mulf %589, %599 : vector<2x32xf32>
    %601 = arith.addf %598, %600 : vector<2x32xf32>
    %602 = math.tanh %601 : vector<2x32xf32>
    %cst_124 = arith.constant 1.000000e+00 : f32
    %603 = vector.broadcast %cst_124 : f32 to vector<2x32xf32>
    %604 = arith.subf %603, %597 : vector<2x32xf32>
    %605 = arith.mulf %604, %602 : vector<2x32xf32>
    %606 = arith.mulf %597, %567 : vector<2x32xf32>
    %607 = arith.addf %605, %606 : vector<2x32xf32>
    %608 = arith.index_cast %c7_i32 : i32 to index
    %c0_125 = arith.constant 0 : index
    %c0_126 = arith.constant 0 : index
    %609 = vector.load %arg1[%608, %c0_125, %c0_126] : memref<8x2x32xf32, #tpu.memory_space<vmem>>, vector<1x2x32xf32>
    %610 = vector.shape_cast %609 : vector<1x2x32xf32> to vector<2x32xf32>
    %cst_127 = arith.constant dense<0.000000e+00> : vector<2x96xf32>
    %611 = tpu.matmul %610, %4, %cst_127 {dimension_numbers = #tpu.dot_dimension_numbers<[1], [0], [0], [1], [0, 0, 1, 1], [], []>} : vector<2x32xf32>, vector<32x96xf32>, vector<2x96xf32> -> vector<2x96xf32>
    %612 = vector.broadcast %6 : vector<1x96xf32> to vector<2x96xf32>
    %613 = arith.addf %611, %612 : vector<2x96xf32>
    %cst_128 = arith.constant dense<0.000000e+00> : vector<2x96xf32>
    %614 = tpu.matmul %572, %5, %cst_128 {dimension_numbers = #tpu.dot_dimension_numbers<[1], [0], [0], [1], [0, 0, 1, 1], [], []>} : vector<2x32xf32>, vector<32x96xf32>, vector<2x96xf32> -> vector<2x96xf32>
    %615 = vector.broadcast %7 : vector<1x96xf32> to vector<2x96xf32>
    %616 = arith.addf %614, %615 : vector<2x96xf32>
    %617 = vector.extract_strided_slice %613 {offsets = [0, 0], sizes = [2, 32], strides = [1, 1]} : vector<2x96xf32> to vector<2x32xf32>
    %618 = vector.extract_strided_slice %616 {offsets = [0, 0], sizes = [2, 32], strides = [1, 1]} : vector<2x96xf32> to vector<2x32xf32>
    %619 = arith.addf %617, %618 : vector<2x32xf32>
    %620 = arith.negf %619 : vector<2x32xf32>
    %621 = math.exp %620 : vector<2x32xf32>
    %cst_129 = arith.constant 1.000000e+00 : f32
    %622 = vector.broadcast %cst_129 : f32 to vector<2x32xf32>
    %623 = arith.addf %622, %621 : vector<2x32xf32>
    %624 = arith.divf %622, %623 : vector<2x32xf32>
    %625 = vector.extract_strided_slice %613 {offsets = [0, 32], sizes = [2, 32], strides = [1, 1]} : vector<2x96xf32> to vector<2x32xf32>
    %626 = vector.extract_strided_slice %616 {offsets = [0, 32], sizes = [2, 32], strides = [1, 1]} : vector<2x96xf32> to vector<2x32xf32>
    %627 = arith.addf %625, %626 : vector<2x32xf32>
    %628 = arith.negf %627 : vector<2x32xf32>
    %629 = math.exp %628 : vector<2x32xf32>
    %cst_130 = arith.constant 1.000000e+00 : f32
    %630 = vector.broadcast %cst_130 : f32 to vector<2x32xf32>
    %631 = arith.addf %630, %629 : vector<2x32xf32>
    %632 = arith.divf %630, %631 : vector<2x32xf32>
    %633 = vector.extract_strided_slice %613 {offsets = [0, 64], sizes = [2, 32], strides = [1, 1]} : vector<2x96xf32> to vector<2x32xf32>
    %634 = vector.extract_strided_slice %616 {offsets = [0, 64], sizes = [2, 32], strides = [1, 1]} : vector<2x96xf32> to vector<2x32xf32>
    %635 = arith.mulf %624, %634 : vector<2x32xf32>
    %636 = arith.addf %633, %635 : vector<2x32xf32>
    %637 = math.tanh %636 : vector<2x32xf32>
    %cst_131 = arith.constant 1.000000e+00 : f32
    %638 = vector.broadcast %cst_131 : f32 to vector<2x32xf32>
    %639 = arith.subf %638, %632 : vector<2x32xf32>
    %640 = arith.mulf %639, %637 : vector<2x32xf32>
    %641 = arith.mulf %632, %572 : vector<2x32xf32>
    %642 = arith.addf %640, %641 : vector<2x32xf32>
    %643 = vector.broadcast %c7_i32 : i32 to vector<2x1xi32>
    %644 = arith.cmpi slt, %643, %9 : vector<2x1xi32>
    %645 = vector.shape_cast %644 : vector<2x1xi1> to vector<2x1xi1>
    %646 = vector.broadcast %645 : vector<2x1xi1> to vector<2x32xi1>
    %647 = arith.select %646, %607, %567 : vector<2x32xi1>, vector<2x32xf32>
    %648 = vector.broadcast %c7_i32 : i32 to vector<2x1xi32>
    %649 = arith.cmpi slt, %648, %11 : vector<2x1xi32>
    %650 = vector.shape_cast %649 : vector<2x1xi1> to vector<2x1xi1>
    %651 = vector.broadcast %650 : vector<2x1xi1> to vector<2x32xi1>
    %652 = arith.select %651, %642, %572 : vector<2x32xi1>, vector<2x32xf32>
    %c8_i32 = arith.constant 8 : i32
    %c0_132 = arith.constant 0 : index
    %c0_133 = arith.constant 0 : index
    %653 = vector.load %arg11[%c0_132, %c0_133] : memref<32x32xf32, #tpu.memory_space<vmem>>, vector<32x32xf32>
    %cst_134 = arith.constant dense<0.000000e+00> : vector<2x32xf32>
    %654 = tpu.matmul %647, %653, %cst_134 {dimension_numbers = #tpu.dot_dimension_numbers<[1], [0], [0], [1], [0, 0, 1, 1], [], []>} : vector<2x32xf32>, vector<32x32xf32>, vector<2x32xf32> -> vector<2x32xf32>
    %c0_135 = arith.constant 0 : index
    %c0_136 = arith.constant 0 : index
    %655 = vector.load %arg12[%c0_135, %c0_136] : memref<32x32xf32, #tpu.memory_space<vmem>>, vector<32x32xf32>
    %cst_137 = arith.constant dense<0.000000e+00> : vector<2x32xf32>
    %656 = tpu.matmul %652, %655, %cst_137 {dimension_numbers = #tpu.dot_dimension_numbers<[1], [0], [0], [1], [0, 0, 1, 1], [], []>} : vector<2x32xf32>, vector<32x32xf32>, vector<2x32xf32> -> vector<2x32xf32>
    %657 = arith.addf %654, %656 : vector<2x32xf32>
    %c0_138 = arith.constant 0 : index
    %c0_139 = arith.constant 0 : index
    %658 = vector.load %arg13[%c0_138, %c0_139] : memref<1x32xf32, #tpu.memory_space<vmem>>, vector<1x32xf32>
    %659 = vector.broadcast %658 : vector<1x32xf32> to vector<2x32xf32>
    %660 = arith.addf %657, %659 : vector<2x32xf32>
    %661 = math.tanh %660 : vector<2x32xf32>
    %c0_140 = arith.constant 0 : index
    %c0_141 = arith.constant 0 : index
    %662 = vector.load %arg14[%c0_140, %c0_141] : memref<32x32xf32, #tpu.memory_space<vmem>>, vector<32x32xf32>
    %cst_142 = arith.constant dense<0.000000e+00> : vector<2x32xf32>
    %663 = tpu.matmul %661, %662, %cst_142 {dimension_numbers = #tpu.dot_dimension_numbers<[1], [0], [0], [1], [0, 0, 1, 1], [], []>} : vector<2x32xf32>, vector<32x32xf32>, vector<2x32xf32> -> vector<2x32xf32>
    %c0_143 = arith.constant 0 : index
    %c0_144 = arith.constant 0 : index
    %664 = vector.load %arg15[%c0_143, %c0_144] : memref<1x32xf32, #tpu.memory_space<vmem>>, vector<1x32xf32>
    %665 = vector.broadcast %664 : vector<1x32xf32> to vector<2x32xf32>
    %666 = arith.addf %663, %665 : vector<2x32xf32>
    %667 = vector.extract_strided_slice %666 {offsets = [0, 0], sizes = [2, 16], strides = [1, 1]} : vector<2x32xf32> to vector<2x16xf32>
    %668 = vector.extract_strided_slice %666 {offsets = [0, 16], sizes = [2, 16], strides = [1, 1]} : vector<2x32xf32> to vector<2x16xf32>
    %cst_145 = arith.constant 5.000000e-01 : f32
    %669 = vector.broadcast %cst_145 : f32 to vector<2x16xf32>
    %670 = arith.mulf %669, %668 : vector<2x16xf32>
    %671 = math.exp %670 : vector<2x16xf32>
    %c0_146 = arith.constant 0 : index
    %c0_147 = arith.constant 0 : index
    %672 = vector.load %arg16[%c0_146, %c0_147] : memref<2x16xf32, #tpu.memory_space<vmem>>, vector<2x16xf32>
    %673 = arith.mulf %671, %672 : vector<2x16xf32>
    %674 = arith.addf %667, %673 : vector<2x16xf32>
    %c0_148 = arith.constant 0 : index
    %c0_149 = arith.constant 0 : index
    %675 = vector.load %arg17[%c0_148, %c0_149] : memref<2x16xf32, #tpu.memory_space<vmem>>, vector<2x16xf32>
    tpu.vector_store %arg17[%c0_148, %c0_149], %674 {strides = array<i32>} : memref<2x16xf32, #tpu.memory_space<vmem>>, vector<2x16xf32>,
    return
  }
}

</mosaic_0001>

<bundles_post_ra>
// kernel: batch_forward.1
= control target key start
LH: loop header
LB: loop body
LE: loop exit
PB: predicated region body
PF: predicated region fallthrough
CT: control target
= control target key end

     0   :  { %s5053_s0 = inlined_call_operand.vmem [shape: f32[8,2,32], index: 0, kind: input, shape index: {}]   ;;  %s5054_s1 = inlined_call_operand.vmem [shape: f32[8,2,32], index: 1, kind: input, shape index: {}]   ;;  %s5055_s2 = inlined_call_operand.vmem [shape: s32[2,2,1], index: 2, kind: input, shape index: {}]   ;;  %s5056_s3 = inlined_call_operand.vmem [shape: f32[32,96], index: 3, kind: input, shape index: {}]   ;;  %s5057_s4 = inlined_call_operand.vmem [shape: f32[32,96], index: 4, kind: input, shape index: {}]   ;;  %s5058_s5 = inlined_call_operand.vmem [shape: f32[1,96], index: 5, kind: input, shape index: {}]   ;;  %s5059_s6 = inlined_call_operand.vmem [shape: f32[1,96], index: 6, kind: input, shape index: {}]   ;;  %s5060_s7 = inlined_call_operand.vmem [shape: f32[32,96], index: 7, kind: input, shape index: {}]   ;;  %s5061_s8 = inlined_call_operand.vmem [shape: f32[32,96], index: 8, kind: input, shape index: {}]   ;;  %s5062_s9 = inlined_call_operand.vmem [shape: f32[1,96], index: 9, kind: input, shape index: {}]   ;;  %s5063_s10 = inlined_call_operand.vmem [shape: f32[1,96], index: 10, kind: input, shape index: {}]   ;;  %s5064_s11 = inlined_call_operand.vmem [shape: f32[32,32], index: 11, kind: input, shape index: {}]   ;;  %s5065_s12 = inlined_call_operand.vmem [shape: f32[32,32], index: 12, kind: input, shape index: {}]   ;;  %s5066_s13 = inlined_call_operand.vmem [shape: f32[1,32], index: 13, kind: input, shape index: {}]   ;;  %s5067_s14 = inlined_call_operand.vmem [shape: f32[32,32], index: 14, kind: input, shape index: {}]   ;;  %s5068_s15 = inlined_call_operand.vmem [shape: f32[1,32], index: 15, kind: input, shape index: {}]   ;;  %s5069_s16 = inlined_call_operand.vmem [shape: f32[2,16], index: 16, kind: input, shape index: {}]   ;;  %s5070_s17 = inlined_call_operand.hbm [shape: f32[2,16], index: 17, kind: output, shape index: {}]  }
   0x1   :  { %5073 = sst [smem:[#allocation5_spill]] %s5053_s0 }
   0x2   :  { %5074 = sst [smem:[#allocation6_spill]] %s5054_s1 }
   0x3   :  { %v57_v0 = vld [vmem:[%s5056_s3] sm:$0xff]  ;;  %v58_v1 = vld [vmem:[%s5056_s3 + $0x8] sm:$0xff]  ;;  %v4286_v3 = vmov 0.0|0.0   ;;  %v59_v6 = vld [vmem:[%s5056_s3 + $0x10] sm:$0xff]  ;;  %vm4287_vm0 = vmmov 0   ;;  %v4288_v11 = vmov 0.0  }
   0x4   :  { %v61_v2 = vld [vmem:[%s5057_s4] sm:$0xff]  ;;  %3935 = vmatprep.subr.bf16.mxu0 %v4286_v3  ;;  %3941 = vmatprep.subr.bf16.mxu1 %v4286_v3  ;;  %v4396_v4 = vpack.c.bf16 %v58_v1, %v57_v0  ;;  %v62_v5 = vld [vmem:[%s5057_s4 + $0x8] sm:$0xff]  ;;  %v60_v7 = vld [vmem:[%s5056_s3 + $0x18] sm:$0xff] }
   0x5   :  { %v4407_v8 = vpack.c.bf16 %v62_v5, %v61_v2  ;;  %v63_v9 = vld [vmem:[%s5057_s4 + $0x10] sm:$0xff]  ;;  %v64_v10 = vld [vmem:[%s5057_s4 + $0x18] sm:$0xff]  ;;  %3558 = vmatprep.mubr.msk.f32.mxu0 %vm4287_vm0, %v4288_v11  ;;  %3569 = vmatprep.mubr.msk.f32.mxu1 %vm4287_vm0, %v4288_v11  ;;  %v4420_v12 = vpack.c.bf16 %v60_v7, %v59_v6  ;;  %v67_v14 = vld [vmem:[%s5060_s7] sm:$0xff] }
   0x6   :  { %3937 = vmatpush3.bf16.msra.mxu0 %v4396_v4  ;;  %v4424_v13 = vpack.c.bf16 %v64_v10, %v63_v9  ;;  %v68_v15 = vld [vmem:[%s5060_s7 + $0x8] sm:$0xff]  ;;  %v71_v16 = vld [vmem:[%s5061_s8] sm:$0xff] }
   0x7   :  { %3943 = vmatpush3.bf16.msra.mxu1 %v4407_v8  ;;  %3938 = vmatprep.subr.bf16.mxu0 %v4286_v3  ;;  %v72_v17 = vld [vmem:[%s5061_s8 + $0x8] sm:$0xff] }
   0x8   :  { %3944 = vmatprep.subr.bf16.mxu1 %v4286_v3 }
   0x9   :  { %22 = vsyncpa [#allocation3], 0  ;;  %s5075_s19 = sld [smem:[#allocation5_spill]]  ;;  %vm87_vm1 = vcmask 261120   ;;  %v4443_v19 = vpack.c.bf16 %v68_v15, %v67_v14  ;;  %v4446_v20 = vpack.c.bf16 %v72_v17, %v71_v16  ;;  %v69_v21 = vld [vmem:[%s5060_s7 + $0x10] sm:$0xff]  ;;  %v70_v22 = vld [vmem:[%s5060_s7 + $0x18] sm:$0xff] }
   0xa   :  { %3940 = vmatpush3.bf16.msra.mxu0 %v4420_v12  ;;  %v73_v23 = vld [vmem:[%s5061_s8 + $0x10] sm:$0xff]  ;;  %v74_v24 = vld [vmem:[%s5061_s8 + $0x18] sm:$0xff]  ;;  %v4465_v25 = vpack.c.bf16 %v70_v22, %v69_v21  ;;  %s5076_s25 = sld [smem:[#allocation6_spill]]  ;;  %v4500_v28 = vld [vmem:[%s5059_s6] ss:$0 sm:$0xff]  ;;  %s4289_s28 = smov 64  }
   0xb   :  { %3946 = vmatpush3.bf16.msra.mxu1 %v4424_v13  ;;  %3947 = vmatprep.subr.bf16.mxu0 %v4286_v3  ;;  %v4468_v26 = vpack.c.bf16 %v74_v24, %v73_v23  ;;  %v4507_v34 = vld [vmem:[%s5063_s10] ss:$0 sm:$0xff]  ;;  %v4290_v52 = vmov 0   ;;  %v4537_v1 = vld [vmem:[%s5055_s2 + $0x2] sm:$0x3]  ;;  %s4291_s3 = smov 96  }
   0xc   :  { %3953 = vmatprep.subr.bf16.mxu1 %v4286_v3  ;;  %v4514_v40 = vld [vmem:[%s5058_s5] ss:$0 sm:$0xff]  ;;  %4154 = vset.pattern.permute.xlu0 %v4290_v52  ;;  %vm455_vm3 = vcmp.gt.s32.totalorder %v4537_v1, 0  ;;  %vm821_vm7 = vcmp.gt.s32.totalorder %v4537_v1, 1  ;;  %vm1187_vm11 = vcmp.gt.s32.totalorder %v4537_v1, 2  ;;  %vm1553_vm15 = vcmp.gt.s32.totalorder %v4537_v1, 3 }
   0xd   :  { %v4520_v43 = vld [vmem:[%s5062_s9] ss:$0 sm:$0xff]  ;;  %4155 = vset.pattern.permute.xlu1 %v4290_v52  ;;  %v456_v5 = vsel %vm455_vm3, 1, %v4290_v52 }
   0xe   :  { %3570 = vmatmul.mubr.f32.vlgmr.msra.gmra.mrb[0].mxu1 %v4288_v11  ;;  %v4526_v50 = vld [vmem:[%s5055_s2] sm:$0x3] }
   0xf   :  { %v80_v18 = vld [vmem:[%s5075_s19] sm:$0x3]  ;;  %3955 = vmatpush3.bf16.msra.mxu1 %v4446_v20  ;;  %3591 = vmatprep.mubr.msk.f32.mxu1 %vm4287_vm0, %v4288_v11  ;;  %vm448_vm2 = vcmp.gt.s32.totalorder %v4526_v50, 0  ;;  %v3314_v7 = vld [vmem:[%s5075_s19 + $0x2] sm:$0x3]  ;;  %vm814_vm6 = vcmp.gt.s32.totalorder %v4526_v50, 1 }
  0x10   :  { %3559 = vmatmul.mubr.msk.f32.vlgmr.msra.gmra.mrb[0].mxu0 %vm87_vm1, %v80_v18  ;;  %3956 = vmatprep.subr.bf16.mxu1 %v4286_v3  ;;  %v266_v27 = vld [vmem:[%s5076_s25] sm:$0x3]  ;;  %v449_v53 = vsel %vm448_vm2, 1, %v4290_v52  ;;  %v3318_v21 = vld [vmem:[%s5076_s25 + $0x2] sm:$0x3]  ;;  %vm1180_vm10 = vcmp.gt.s32.totalorder %v4526_v50, 2 }
  0x11   :  { %3949 = vmatpush3.bf16.msra.mxu0 %v4443_v19  ;;  %3580 = vmatprep.mubr.msk.f32.mxu0 %vm4287_vm0, %v4288_v11  ;;  %vm1546_vm14 = vcmp.gt.s32.totalorder %v4526_v50, 3 }
  0x12   :  { %3950 = vmatprep.subr.bf16.mxu0 %v4286_v3 }
  0x13   :  { %3958 = vmatpush3.bf16.msra.mxu1 %v4468_v26 }
  0x14   :  { %3965 = vmatprep.subr.bf16.mxu1 %v4286_v3 }
  0x15   :  { %3952 = vmatpush3.bf16.msra.mxu0 %v4465_v25 }
  0x16   :  { %3959 = vmatprep.subr.bf16.mxu0 %v4286_v3  ;;  %3592 = vmatmul.mubr.f32.vlgmr.msra.gmra.mrb[2].mxu1 %v4288_v11 }
  0x17   :  { %3967 = vmatpush3.bf16.msra.mxu1 %v4407_v8  ;;  %3613 = vmatprep.mubr.msk.f32.mxu1 %vm4287_vm0, %v4288_v11 }
  0x18   :  { %3581 = vmatmul.mubr.msk.f32.vlgmr.msra.gmra.mrb[2].mxu0 %vm87_vm1, %v266_v27  ;;  %3968 = vmatprep.subr.bf16.mxu1 %v4286_v3 }
  0x19   :  { %3961 = vmatpush3.bf16.msra.mxu0 %v4396_v4  ;;  %3602 = vmatprep.mubr.msk.f32.mxu0 %vm4287_vm0, %v4288_v11 }
  0x1a   :  { %3962 = vmatprep.subr.bf16.mxu0 %v4286_v3 }
  0x1b   :  { %3970 = vmatpush3.bf16.msra.mxu1 %v4424_v13 }
  0x1c   :  { %3977 = vmatprep.subr.bf16.mxu1 %v4286_v3 }
  0x1d   :  { %3964 = vmatpush3.bf16.msra.mxu0 %v4420_v12 }
  0x1e   :  { %3971 = vmatprep.subr.bf16.mxu0 %v4286_v3 }
  0x20   :  { %3603 = vmatmul.mubr.msk.f32.vlgmr.msra.gmra.mrb[4].mxu0 %vm87_vm1, %v3314_v7 }
  0x21   :  { %3973 = vmatpush3.bf16.msra.mxu0 %v4443_v19  ;;  %3624 = vmatprep.mubr.msk.f32.mxu0 %vm4287_vm0, %v4288_v11 }
  0x22   :  { %3974 = vmatprep.subr.bf16.mxu0 %v4286_v3 }
  0x25   :  { %3976 = vmatpush3.bf16.msra.mxu0 %v4465_v25 }
  0x26   :  { %3983 = vmatprep.subr.bf16.mxu0 %v4286_v3 }
  0x28   :  { %3625 = vmatmul.mubr.msk.f32.vlgmr.msra.gmra.mrb[6].mxu0 %vm87_vm1, %v3318_v21 }
  0x29   :  { %3985 = vmatpush3.bf16.msra.mxu0 %v4396_v4  ;;  %3646 = vmatprep.mubr.msk.f32.mxu0 %vm4287_vm0, %v4288_v11 }
  0x2a   :  { %3986 = vmatprep.subr.bf16.mxu0 %v4286_v3 }
  0x2d   :  { %3988 = vmatpush3.bf16.msra.mxu0 %v4420_v12 }
  0x2e   :  { %3995 = vmatprep.subr.bf16.mxu0 %v4286_v3 }
  0xe1   :  { %v236_v30 = vpop.f32.mrb[0].mxu1 }
  0xe2   :  { %v237_v32 = vadd.f32 %v4500_v28, %v236_v30  ;;  %v3571_v33 = vpop.f32.mrb[1].mxu1 }
  0xe3   :  { %v157_v29 = vpop.f32.mrb[0].mxu0 }
  0xe4   :  { %v3560_v31 = vpop.f32.mrb[1].mxu0  ;;  %248 = vrot.lane.b32.xlu0 %v237_v32, %s4289_s28  ;;  %v158_v41 = vadd.f32 %v4514_v40, %v157_v29 }
  0xe6   :  { %v240_v42 = vadd.f32 %v237_v32, %v158_v41 }
  0xe8   :  { %v3309_v44 = vmul.f32 -1.442695, %v240_v42 }
  0xe9   :  { %v418_v36 = vpop.f32.mrb[2].mxu1 }
  0xea   :  { %v419_v38 = vadd.f32 %v4507_v34, %v418_v36  ;;  %v3593_v39 = vpop.f32.mrb[3].mxu1  ;;  %4156 = vpow2.f32 %v3309_v44 }
  0xeb   :  { %v342_v35 = vpop.f32.mrb[2].mxu0 }
  0xec   :  { %v3582_v37 = vpop.f32.mrb[3].mxu0  ;;  %430 = vrot.lane.b32.xlu0 %v419_v38, %s4289_s28  ;;  %v343_v45 = vadd.f32 %v4520_v43, %v342_v35 }
  0xee   :  { %v422_v46 = vadd.f32 %v419_v38, %v343_v45 }
  0xf0   :  { %v3313_v47 = vmul.f32 -1.442695, %v422_v46  ;;  %451 = vperm.xlu0 %4154, %v449_v53  }
  0xf2   :  { %4158 = vpow2.f32 %v3313_v47 }
  0xf3   :  { %v533_v35 = vpop.f32.mrb[4].mxu0 }
  0xf4   :  { %v4157_v48 = vpop.eup %4156  ;;  %v3604_v36 = vpop.f32.mrb[5].mxu0  ;;  %v534_v47 = vadd.f32 %v4514_v40, %v533_v35 }
  0xf5   :  { %v244_v49 = vadd.f32 1.0, %v4157_v48 }
  0xf7   :  { %4160 = vrcp.f32 %v244_v49 }
  0xfb   :  { %v709_v37 = vpop.f32.mrb[6].mxu0 }
  0xfc   :  { %v4159_v51 = vpop.eup %4158  ;;  %v3626_v38 = vpop.f32.mrb[7].mxu0 }
  0xfd   :  { %v426_v54 = vadd.f32 1.0, %v4159_v51  ;;  %v710_v51 = vadd.f32 %v4520_v43, %v709_v37 }
  0xff   :  { %4162 = vrcp.f32 %v426_v54 }
 0x101   :  { %v4161_v55 = vpop.eup %4160 }
 0x102   :  { %v258_v9 = vsub.f32 1.0, %v4161_v55  ;;  %v264_v15 = vmul.f32 0.0, %v4161_v55 }
 0x109   :  { %v4163_v58 = vpop.eup %4162 }
 0x10a   :  { %v440_v23 = vsub.f32 1.0, %v4163_v58  ;;  %v446_v27 = vmul.f32 0.0, %v4163_v58 }
 0x156   :  { %v249_v56 = vpop.permute.xlu0 %248 }
 0x157   :  { %v251_v57 = vmul.f32 %v4161_v55, %v249_v56 }
 0x159   :  { %253 = vrot.lane.b32.xlu1 %v251_v57, %s4289_s28 }
 0x15e   :  { %v431_v59 = vpop.permute.xlu0 %430 }
 0x15f   :  { %v433_v60 = vmul.f32 %v4163_v58, %v431_v59 }
 0x161   :  { %435 = vrot.lane.b32.xlu1 %v433_v60, %s4289_s28 }
 0x16f   :  { %v452_v10 = vpop.permute.xlu0 %451 }
 0x170   :  { %vm453_vm4 = vcmp.eq.s32.totalorder %v452_v10, 1 }
 0x1cb   :  { %v254_v61 = vpop.permute.xlu1 %253 }
 0x1cc   :  { %v256_v62 = vadd.f32 %v254_v61, %v158_v41 }
 0x1ce   :  { %4164 = vtanh.f32 %v256_v62  ;;  %v815_v62 = vsel %vm814_vm6, 1, %v4290_v52 }
 0x1d3   :  { %v436_v63 = vpop.permute.xlu1 %435 }
 0x1d4   :  { %v438_v0 = vadd.f32 %v436_v63, %v343_v45  ;;  %v822_v63 = vsel %vm821_vm7, 1, %v4290_v52 }
 0x1d6   :  { %4166 = vtanh.f32 %v438_v0 }
 0x1d8   :  { %v4165_v2 = vpop.eup %4164 }
 0x1d9   :  { %260 = vrot.lane.b32.xlu1 %v4165_v2, %s4291_s3 }
 0x1dd   :  { %458 = vperm.xlu1 %4155, %v456_v5  }
 0x1e0   :  { %v4167_v6 = vpop.eup %4166 }
 0x1e1   :  { %442 = vrot.lane.b32.xlu0 %v4167_v6, %s4291_s3 }
 0x24b   :  { %v261_v14 = vpop.permute.xlu1 %260 }
 0x24c   :  { %v263_v16 = vmul.f32 %v261_v14, %v258_v9 }
 0x24e   :  { %v265_v17 = vadd.f32 %v264_v15, %v263_v16  ;;  %v3322_v16 = vld [vmem:[%s5075_s19 + $0x4] sm:$0x3] }
 0x24f   :  { %3647 = vmatmul.mubr.msk.f32.vlgmr.msra.gmra.mrb[8].mxu0 %vm87_vm1, %v3322_v16 }
 0x250   :  { %v4553_v18 = vsel %vm453_vm4, %v265_v17, 0.0  ;;  %3997 = vmatpush3.bf16.msra.mxu0 %v4443_v19  ;;  %3668 = vmatprep.mubr.msk.f32.mxu0 %vm4287_vm0, %v4288_v11  ;;  %vm1912_vm4 = vcmp.gt.s32.totalorder %v4526_v50, 4 }
 0x251   :  { %538 = vrot.lane.b32.xlu1 %v4553_v18, %s4291_s3  ;;  %3998 = vmatprep.subr.bf16.mxu0 %v4286_v3 }
 0x253   :  { %v443_v22 = vpop.permute.xlu0 %442 }
 0x254   :  { %v445_v24 = vmul.f32 %v443_v22, %v440_v23  ;;  %4000 = vmatpush3.bf16.msra.mxu0 %v4465_v25 }
 0x255   :  { %4007 = vmatprep.subr.bf16.mxu0 %v4286_v3 }
 0x256   :  { %v447_v29 = vadd.f32 %v446_v27, %v445_v24 }
 0x25c   :  { %v459_v30 = vpop.permute.xlu1 %458 }
 0x25d   :  { %vm460_vm5 = vcmp.eq.s32.totalorder %v459_v30, 1  ;;  %v3326_v30 = vld [vmem:[%s5076_s25 + $0x4] sm:$0x3] }
 0x25e   :  { %v4567_v31 = vsel %vm460_vm5, %v447_v29, 0.0  ;;  %3669 = vmatmul.mubr.msk.f32.vlgmr.msra.gmra.mrb[10].mxu0 %vm87_vm1, %v3326_v30  ;;  %vm1919_vm5 = vcmp.gt.s32.totalorder %v4537_v1, 4 }
 0x25f   :  { %714 = vrot.lane.b32.xlu0 %v4567_v31, %s4291_s3  ;;  %4009 = vmatpush3.bf16.msra.mxu0 %v4396_v4 }
 0x260   :  { %3690 = vmatprep.mubr.msk.f32.mxu0 %vm4287_vm0, %v4288_v11  ;;  %4010 = vmatprep.subr.bf16.mxu0 %v4286_v3 }
 0x263   :  { %4012 = vmatpush3.bf16.msra.mxu0 %v4420_v12 }
 0x264   :  { %4019 = vmatprep.subr.bf16.mxu0 %v4286_v3 }
 0x2c3   :  { %v539_v32 = vpop.permute.xlu1 %538 }
 0x2c4   :  { %3614 = vmatmul.mubr.msk.f32.vlgmr.msra.gmra.mrb[4].mxu1 %vm87_vm1, %v539_v32 }
 0x2c5   :  { %3979 = vmatpush3.bf16.msra.mxu1 %v4446_v20  ;;  %3635 = vmatprep.mubr.msk.f32.mxu1 %vm4287_vm0, %v4288_v11 }
 0x2c6   :  { %3980 = vmatprep.subr.bf16.mxu1 %v4286_v3 }
 0x2c9   :  { %3982 = vmatpush3.bf16.msra.mxu1 %v4468_v26 }
 0x2ca   :  { %3989 = vmatprep.subr.bf16.mxu1 %v4286_v3 }
 0x2d1   :  { %v715_v33 = vpop.permute.xlu0 %714 }
 0x2d2   :  { %3636 = vmatmul.mubr.msk.f32.vlgmr.msra.gmra.mrb[6].mxu1 %vm87_vm1, %v715_v33 }
 0x2d3   :  { %3991 = vmatpush3.bf16.msra.mxu1 %v4407_v8  ;;  %3657 = vmatprep.mubr.msk.f32.mxu1 %vm4287_vm0, %v4288_v11 }
 0x2d4   :  { %3992 = vmatprep.subr.bf16.mxu1 %v4286_v3 }
 0x2d7   :  { %3994 = vmatpush3.bf16.msra.mxu1 %v4424_v13 }
 0x2d8   :  { %4001 = vmatprep.subr.bf16.mxu1 %v4286_v3 }
 0x397   :  { %v608_v39 = vpop.f32.mrb[4].mxu1 }
 0x398   :  { %v609_v41 = vadd.f32 %v4500_v28, %v608_v39  ;;  %v3615_v42 = vpop.f32.mrb[5].mxu1 }
 0x39a   :  { %620 = vrot.lane.b32.xlu1 %v609_v41, %s4289_s28  ;;  %v612_v48 = vadd.f32 %v609_v41, %v534_v47 }
 0x39c   :  { %v3317_v49 = vmul.f32 -1.442695, %v612_v48 }
 0x39e   :  { %4168 = vpow2.f32 %v3317_v49 }
 0x3a5   :  { %v784_v44 = vpop.f32.mrb[6].mxu1 }
 0x3a6   :  { %v785_v45 = vadd.f32 %v4507_v34, %v784_v44  ;;  %v3637_v46 = vpop.f32.mrb[7].mxu1 }
 0x3a8   :  { %796 = vrot.lane.b32.xlu0 %v785_v45, %s4289_s28  ;;  %v788_v53 = vadd.f32 %v785_v45, %v710_v51  ;;  %v4169_v54 = vpop.eup %4168 }
 0x3a9   :  { %v616_v56 = vadd.f32 1.0, %v4169_v54 }
 0x3aa   :  { %v3321_v55 = vmul.f32 -1.442695, %v788_v53 }
 0x3ac   :  { %4170 = vpow2.f32 %v3321_v55 }
 0x3ad   :  { %4172 = vrcp.f32 %v616_v56 }
 0x3b6   :  { %v4171_v57 = vpop.eup %4170 }
 0x3b7   :  { %v4173_v58 = vpop.eup %4172  ;;  %v792_v59 = vadd.f32 1.0, %v4171_v57 }
 0x3b8   :  { %v630_v17 = vsub.f32 1.0, %v4173_v58  ;;  %v636_v23 = vmul.f32 %v4173_v58, %v4553_v18 }
 0x3b9   :  { %4174 = vrcp.f32 %v792_v59 }
 0x3c3   :  { %v4175_v0 = vpop.eup %4174 }
 0x3c4   :  { %v812_v35 = vmul.f32 %v4175_v0, %v4567_v31 }
 0x40c   :  { %v621_v60 = vpop.permute.xlu1 %620 }
 0x40d   :  { %v623_v61 = vmul.f32 %v4173_v58, %v621_v60 }
 0x40f   :  { %625 = vrot.lane.b32.xlu1 %v623_v61, %s4289_s28 }
 0x413   :  { %817 = vperm.xlu1 %4155, %v815_v62  }
 0x417   :  { %824 = vperm.xlu1 %4155, %v822_v63  }
 0x41a   :  { %v797_v2 = vpop.permute.xlu0 %796 }
 0x41b   :  { %v799_v5 = vmul.f32 %v4175_v0, %v797_v2 }
 0x41d   :  { %801 = vrot.lane.b32.xlu0 %v799_v5, %s4289_s28 }
 0x481   :  { %v626_v6 = vpop.permute.xlu1 %625 }
 0x482   :  { %v628_v7 = vadd.f32 %v626_v6, %v534_v47  ;;  %v1181_v6 = vsel %vm1180_vm10, 1, %v4290_v52 }
 0x484   :  { %4176 = vtanh.f32 %v628_v7  ;;  %v1188_v7 = vsel %vm1187_vm11, 1, %v4290_v52 }
 0x48e   :  { %v4177_v9 = vpop.eup %4176 }
 0x48f   :  { %632 = vrot.lane.b32.xlu0 %v4177_v9, %s4291_s3  ;;  %v802_v10 = vpop.permute.xlu0 %801 }
 0x490   :  { %v804_v14 = vadd.f32 %v802_v10, %v710_v51 }
 0x492   :  { %4178 = vtanh.f32 %v804_v14  ;;  %v818_v22 = vpop.permute.xlu1 %817 }
 0x493   :  { %vm819_vm8 = vcmp.eq.s32.totalorder %v818_v22, 1 }
 0x496   :  { %v825_v33 = vpop.permute.xlu1 %824 }
 0x497   :  { %vm826_vm9 = vcmp.eq.s32.totalorder %v825_v33, 1 }
 0x49c   :  { %v4179_v15 = vpop.eup %4178 }
 0x49d   :  { %808 = vrot.lane.b32.xlu0 %v4179_v15, %s4291_s3 }
 0x501   :  { %v633_v21 = vpop.permute.xlu0 %632 }
 0x502   :  { %v635_v24 = vmul.f32 %v633_v21, %v630_v17 }
 0x504   :  { %v637_v27 = vadd.f32 %v636_v23, %v635_v24  ;;  %v3330_v24 = vld [vmem:[%s5075_s19 + $0x6] sm:$0x3] }
 0x505   :  { %3691 = vmatmul.mubr.msk.f32.vlgmr.msra.gmra.mrb[12].mxu0 %vm87_vm1, %v3330_v24 }
 0x506   :  { %v4611_v29 = vsel %vm819_vm8, %v637_v27, %v4553_v18  ;;  %v806_v18 = vsub.f32 1.0, %v4175_v0  ;;  %4021 = vmatpush3.bf16.msra.mxu0 %v4443_v19  ;;  %3712 = vmatprep.mubr.msk.f32.mxu0 %vm4287_vm0, %v4288_v11  ;;  %vm2278_vm8 = vcmp.gt.s32.totalorder %v4526_v50, 5 }
 0x507   :  { %904 = vrot.lane.b32.xlu1 %v4611_v29, %s4291_s3  ;;  %4022 = vmatprep.subr.bf16.mxu0 %v4286_v3 }
 0x50a   :  { %4024 = vmatpush3.bf16.msra.mxu0 %v4465_v25 }
 0x50b   :  { %4031 = vmatprep.subr.bf16.mxu0 %v4286_v3 }
 0x50f   :  { %v809_v32 = vpop.permute.xlu0 %808 }
 0x510   :  { %v811_v36 = vmul.f32 %v809_v32, %v806_v18 }
 0x512   :  { %v813_v37 = vadd.f32 %v812_v35, %v811_v36 }
 0x514   :  { %v4627_v38 = vsel %vm826_vm9, %v813_v37, %v4567_v31  ;;  %v899_v31 = vpop.f32.mrb[8].mxu0  ;;  %v3334_v37 = vld [vmem:[%s5076_s25 + $0x6] sm:$0x3]  ;;  %vm2285_vm9 = vcmp.gt.s32.totalorder %v4537_v1, 5  ;;  %v3354_v1 = vld [vmem:[%s5075_s19 + $0xc] sm:$0x3] }
 0x515   :  { %1080 = vrot.lane.b32.xlu0 %v4627_v38, %s4291_s3  ;;  %v3648_v42 = vpop.f32.mrb[9].mxu0  ;;  %v900_v54 = vadd.f32 %v4514_v40, %v899_v31  ;;  %3713 = vmatmul.mubr.msk.f32.vlgmr.msra.gmra.mrb[14].mxu0 %vm87_vm1, %v3334_v37 }
 0x516   :  { %v1075_v44 = vpop.f32.mrb[10].mxu0  ;;  %4033 = vmatpush3.bf16.msra.mxu0 %v4396_v4  ;;  %3734 = vmatprep.mubr.msk.f32.mxu0 %vm4287_vm0, %v4288_v11 }
 0x517   :  { %v3670_v45 = vpop.f32.mrb[11].mxu0  ;;  %v1076_v57 = vadd.f32 %v4520_v43, %v1075_v44  ;;  %4034 = vmatprep.subr.bf16.mxu0 %v4286_v3 }
 0x51a   :  { %4036 = vmatpush3.bf16.msra.mxu0 %v4420_v12 }
 0x51b   :  { %4043 = vmatprep.subr.bf16.mxu0 %v4286_v3 }
 0x579   :  { %v905_v39 = vpop.permute.xlu1 %904 }
 0x57a   :  { %3658 = vmatmul.mubr.msk.f32.vlgmr.msra.gmra.mrb[8].mxu1 %vm87_vm1, %v905_v39 }
 0x57b   :  { %4003 = vmatpush3.bf16.msra.mxu1 %v4446_v20  ;;  %3679 = vmatprep.mubr.msk.f32.mxu1 %vm4287_vm0, %v4288_v11 }
 0x57c   :  { %4004 = vmatprep.subr.bf16.mxu1 %v4286_v3 }
 0x57f   :  { %4006 = vmatpush3.bf16.msra.mxu1 %v4468_v26 }
 0x580   :  { %4013 = vmatprep.subr.bf16.mxu1 %v4286_v3 }
 0x587   :  { %v1081_v41 = vpop.permute.xlu0 %1080 }
 0x588   :  { %3680 = vmatmul.mubr.msk.f32.vlgmr.msra.gmra.mrb[10].mxu1 %vm87_vm1, %v1081_v41 }
 0x589   :  { %4015 = vmatpush3.bf16.msra.mxu1 %v4407_v8  ;;  %3701 = vmatprep.mubr.msk.f32.mxu1 %vm4287_vm0, %v4288_v11 }
 0x58a   :  { %4016 = vmatprep.subr.bf16.mxu1 %v4286_v3 }
 0x58d   :  { %4018 = vmatpush3.bf16.msra.mxu1 %v4424_v13 }
 0x58e   :  { %4025 = vmatprep.subr.bf16.mxu1 %v4286_v3 }
 0x64d   :  { %v974_v46 = vpop.f32.mrb[8].mxu1 }
 0x64e   :  { %v975_v47 = vadd.f32 %v4500_v28, %v974_v46  ;;  %v3659_v48 = vpop.f32.mrb[9].mxu1 }
 0x650   :  { %986 = vrot.lane.b32.xlu1 %v975_v47, %s4289_s28  ;;  %v978_v55 = vadd.f32 %v975_v47, %v900_v54 }
 0x652   :  { %v3325_v56 = vmul.f32 -1.442695, %v978_v55 }
 0x654   :  { %4180 = vpow2.f32 %v3325_v56 }
 0x65b   :  { %v1150_v49 = vpop.f32.mrb[10].mxu1 }
 0x65c   :  { %v1151_v51 = vadd.f32 %v4507_v34, %v1150_v49  ;;  %v3681_v53 = vpop.f32.mrb[11].mxu1 }
 0x65e   :  { %1162 = vrot.lane.b32.xlu0 %v1151_v51, %s4289_s28  ;;  %v1154_v58 = vadd.f32 %v1151_v51, %v1076_v57  ;;  %v4181_v59 = vpop.eup %4180 }
 0x65f   :  { %v982_v61 = vadd.f32 1.0, %v4181_v59 }
 0x660   :  { %v3329_v60 = vmul.f32 -1.442695, %v1154_v58 }
 0x662   :  { %4182 = vpow2.f32 %v3329_v60 }
 0x663   :  { %4184 = vrcp.f32 %v982_v61 }
 0x66c   :  { %v4183_v62 = vpop.eup %4182 }
 0x66d   :  { %v4185_v63 = vpop.eup %4184  ;;  %v1158_v0 = vadd.f32 1.0, %v4183_v62 }
 0x66e   :  { %v996_v27 = vsub.f32 1.0, %v4185_v63  ;;  %v1002_v32 = vmul.f32 %v4185_v63, %v4611_v29 }
 0x66f   :  { %4186 = vrcp.f32 %v1158_v0 }
 0x679   :  { %v4187_v9 = vpop.eup %4186 }
 0x67a   :  { %v1178_v31 = vmul.f32 %v4187_v9, %v4627_v38 }
 0x6c2   :  { %v987_v2 = vpop.permute.xlu1 %986 }
 0x6c3   :  { %v989_v5 = vmul.f32 %v4185_v63, %v987_v2 }
 0x6c5   :  { %991 = vrot.lane.b32.xlu1 %v989_v5, %s4289_s28 }
 0x6c9   :  { %1183 = vperm.xlu1 %4155, %v1181_v6  }
 0x6cd   :  { %1190 = vperm.xlu1 %4155, %v1188_v7  }
 0x6d0   :  { %v1163_v10 = vpop.permute.xlu0 %1162 }
 0x6d1   :  { %v1165_v14 = vmul.f32 %v4187_v9, %v1163_v10 }
 0x6d3   :  { %1167 = vrot.lane.b32.xlu0 %v1165_v14, %s4289_s28 }
 0x737   :  { %v992_v15 = vpop.permute.xlu1 %991 }
 0x738   :  { %v994_v16 = vadd.f32 %v992_v15, %v900_v54  ;;  %v1547_v15 = vsel %vm1546_vm14, 1, %v4290_v52 }
 0x73a   :  { %4188 = vtanh.f32 %v994_v16  ;;  %v1554_v16 = vsel %vm1553_vm15, 1, %v4290_v52 }
 0x744   :  { %v4189_v17 = vpop.eup %4188 }
 0x745   :  { %998 = vrot.lane.b32.xlu0 %v4189_v17, %s4291_s3  ;;  %v1168_v21 = vpop.permute.xlu0 %1167 }
 0x746   :  { %v1170_v22 = vadd.f32 %v1168_v21, %v1076_v57 }
 0x748   :  { %4190 = vtanh.f32 %v1170_v22  ;;  %v1184_v18 = vpop.permute.xlu1 %1183 }
 0x749   :  { %vm1185_vm12 = vcmp.eq.s32.totalorder %v1184_v18, 1 }
 0x74c   :  { %v1191_v41 = vpop.permute.xlu1 %1190 }
 0x74d   :  { %vm1192_vm13 = vcmp.eq.s32.totalorder %v1191_v41, 1 }
 0x752   :  { %v4191_v23 = vpop.eup %4190 }
 0x753   :  { %1174 = vrot.lane.b32.xlu0 %v4191_v23, %s4291_s3 }
 0x7b7   :  { %v999_v30 = vpop.permute.xlu0 %998 }
 0x7b8   :  { %v1001_v33 = vmul.f32 %v999_v30, %v996_v27 }
 0x7ba   :  { %v1003_v35 = vadd.f32 %v1002_v32, %v1001_v33  ;;  %v3338_v33 = vld [vmem:[%s5075_s19 + $0x8] sm:$0x3] }
 0x7bb   :  { %3735 = vmatmul.mubr.msk.f32.vlgmr.msra.gmra.mrb[16].mxu0 %vm87_vm1, %v3338_v33 }
 0x7bc   :  { %v4671_v36 = vsel %vm1185_vm12, %v1003_v35, %v4611_v29  ;;  %v1172_v29 = vsub.f32 1.0, %v4187_v9  ;;  %4045 = vmatpush3.bf16.msra.mxu0 %v4443_v19  ;;  %3756 = vmatprep.mubr.msk.f32.mxu0 %vm4287_vm0, %v4288_v11 }
 0x7bd   :  { %1270 = vrot.lane.b32.xlu1 %v4671_v36, %s4291_s3  ;;  %4046 = vmatprep.subr.bf16.mxu0 %v4286_v3 }
 0x7c0   :  { %4048 = vmatpush3.bf16.msra.mxu0 %v4465_v25 }
 0x7c1   :  { %4055 = vmatprep.subr.bf16.mxu0 %v4286_v3 }
 0x7c5   :  { %v1175_v39 = vpop.permute.xlu0 %1174 }
 0x7c6   :  { %v1177_v42 = vmul.f32 %v1175_v39, %v1172_v29 }
 0x7c8   :  { %v1179_v44 = vadd.f32 %v1178_v31, %v1177_v42 }
 0x7ca   :  { %v4687_v45 = vsel %vm1192_vm13, %v1179_v44, %v4627_v38  ;;  %v1265_v38 = vpop.f32.mrb[12].mxu0  ;;  %v3342_v44 = vld [vmem:[%s5076_s25 + $0x8] sm:$0x3] }
 0x7cb   :  { %1446 = vrot.lane.b32.xlu0 %v4687_v45, %s4291_s3  ;;  %v3692_v48 = vpop.f32.mrb[13].mxu0  ;;  %v1266_v59 = vadd.f32 %v4514_v40, %v1265_v38  ;;  %3757 = vmatmul.mubr.msk.f32.vlgmr.msra.gmra.mrb[18].mxu0 %vm87_vm1, %v3342_v44 }
 0x7cc   :  { %v1441_v49 = vpop.f32.mrb[14].mxu0  ;;  %4057 = vmatpush3.bf16.msra.mxu0 %v4396_v4  ;;  %3778 = vmatprep.mubr.msk.f32.mxu0 %vm4287_vm0, %v4288_v11 }
 0x7cd   :  { %v3714_v51 = vpop.f32.mrb[15].mxu0  ;;  %v1442_v62 = vadd.f32 %v4520_v43, %v1441_v49  ;;  %4058 = vmatprep.subr.bf16.mxu0 %v4286_v3 }
 0x7d0   :  { %4060 = vmatpush3.bf16.msra.mxu0 %v4420_v12 }
 0x7d1   :  { %4067 = vmatprep.subr.bf16.mxu0 %v4286_v3 }
 0x82f   :  { %v1271_v46 = vpop.permute.xlu1 %1270 }
 0x830   :  { %3702 = vmatmul.mubr.msk.f32.vlgmr.msra.gmra.mrb[12].mxu1 %vm87_vm1, %v1271_v46 }
 0x831   :  { %4027 = vmatpush3.bf16.msra.mxu1 %v4446_v20  ;;  %3723 = vmatprep.mubr.msk.f32.mxu1 %vm4287_vm0, %v4288_v11 }
 0x832   :  { %4028 = vmatprep.subr.bf16.mxu1 %v4286_v3 }
 0x835   :  { %4030 = vmatpush3.bf16.msra.mxu1 %v4468_v26 }
 0x836   :  { %4037 = vmatprep.subr.bf16.mxu1 %v4286_v3 }
 0x83d   :  { %v1447_v47 = vpop.permute.xlu0 %1446 }
 0x83e   :  { %3724 = vmatmul.mubr.msk.f32.vlgmr.msra.gmra.mrb[14].mxu1 %vm87_vm1, %v1447_v47 }
 0x83f   :  { %4039 = vmatpush3.bf16.msra.mxu1 %v4407_v8  ;;  %3745 = vmatprep.mubr.msk.f32.mxu1 %vm4287_vm0, %v4288_v11 }
 0x840   :  { %4040 = vmatprep.subr.bf16.mxu1 %v4286_v3 }
 0x843   :  { %4042 = vmatpush3.bf16.msra.mxu1 %v4424_v13 }
 0x844   :  { %4049 = vmatprep.subr.bf16.mxu1 %v4286_v3 }
 0x903   :  { %v1340_v53 = vpop.f32.mrb[12].mxu1 }
 0x904   :  { %v1341_v54 = vadd.f32 %v4500_v28, %v1340_v53  ;;  %v3703_v55 = vpop.f32.mrb[13].mxu1 }
 0x906   :  { %1352 = vrot.lane.b32.xlu1 %v1341_v54, %s4289_s28  ;;  %v1344_v60 = vadd.f32 %v1341_v54, %v1266_v59 }
 0x908   :  { %v3333_v61 = vmul.f32 -1.442695, %v1344_v60 }
 0x90a   :  { %4192 = vpow2.f32 %v3333_v61 }
 0x911   :  { %v1516_v56 = vpop.f32.mrb[14].mxu1 }
 0x912   :  { %v1517_v57 = vadd.f32 %v4507_v34, %v1516_v56  ;;  %v3725_v58 = vpop.f32.mrb[15].mxu1 }
 0x914   :  { %1528 = vrot.lane.b32.xlu0 %v1517_v57, %s4289_s28  ;;  %v1520_v63 = vadd.f32 %v1517_v57, %v1442_v62  ;;  %v4193_v0 = vpop.eup %4192 }
 0x915   :  { %v1348_v5 = vadd.f32 1.0, %v4193_v0 }
 0x916   :  { %v3337_v2 = vmul.f32 -1.442695, %v1520_v63 }
 0x918   :  { %4194 = vpow2.f32 %v3337_v2 }
 0x919   :  { %4196 = vrcp.f32 %v1348_v5 }
 0x922   :  { %v4195_v6 = vpop.eup %4194 }
 0x923   :  { %v4197_v7 = vpop.eup %4196  ;;  %v1524_v9 = vadd.f32 1.0, %v4195_v6 }
 0x924   :  { %v1362_v35 = vsub.f32 1.0, %v4197_v7  ;;  %v1368_v39 = vmul.f32 %v4197_v7, %v4671_v36 }
 0x925   :  { %4198 = vrcp.f32 %v1524_v9 }
 0x92f   :  { %v4199_v17 = vpop.eup %4198 }
 0x930   :  { %v1544_v38 = vmul.f32 %v4199_v17, %v4687_v45 }
 0x978   :  { %v1353_v10 = vpop.permute.xlu1 %1352 }
 0x979   :  { %v1355_v14 = vmul.f32 %v4197_v7, %v1353_v10 }
 0x97b   :  { %1357 = vrot.lane.b32.xlu1 %v1355_v14, %s4289_s28 }
 0x97f   :  { %1549 = vperm.xlu1 %4155, %v1547_v15  }
 0x983   :  { %1556 = vperm.xlu1 %4155, %v1554_v16  }
 0x986   :  { %v1529_v21 = vpop.permute.xlu0 %1528 }
 0x987   :  { %v1531_v22 = vmul.f32 %v4199_v17, %v1529_v21 }
 0x989   :  { %1533 = vrot.lane.b32.xlu0 %v1531_v22, %s4289_s28 }
 0x9ed   :  { %v1358_v23 = vpop.permute.xlu1 %1357 }
 0x9ee   :  { %v1360_v24 = vadd.f32 %v1358_v23, %v1266_v59  ;;  %v1913_v23 = vsel %vm1912_vm4, 1, %v4290_v52 }
 0x9f0   :  { %4200 = vtanh.f32 %v1360_v24  ;;  %v1920_v24 = vsel %vm1919_vm5, 1, %v4290_v52 }
 0x9fa   :  { %v4201_v27 = vpop.eup %4200 }
 0x9fb   :  { %1364 = vrot.lane.b32.xlu0 %v4201_v27, %s4291_s3  ;;  %v1534_v30 = vpop.permute.xlu0 %1533 }
 0x9fc   :  { %v1536_v18 = vadd.f32 %v1534_v30, %v1442_v62 }
 0x9fe   :  { %4202 = vtanh.f32 %v1536_v18  ;;  %v1550_v29 = vpop.permute.xlu1 %1549 }
 0x9ff   :  { %vm1551_vm2 = vcmp.eq.s32.totalorder %v1550_v29, 1 }
 0xa02   :  { %v1557_v47 = vpop.permute.xlu1 %1556 }
 0xa03   :  { %vm1558_vm3 = vcmp.eq.s32.totalorder %v1557_v47, 1 }
 0xa08   :  { %v4203_v32 = vpop.eup %4202 }
 0xa09   :  { %1540 = vrot.lane.b32.xlu0 %v4203_v32, %s4291_s3 }
 0xa6d   :  { %v1365_v37 = vpop.permute.xlu0 %1364 }
 0xa6e   :  { %v1367_v41 = vmul.f32 %v1365_v37, %v1362_v35 }
 0xa70   :  { %v1369_v31 = vadd.f32 %v1368_v39, %v1367_v41  ;;  %v3346_v41 = vld [vmem:[%s5075_s19 + $0xa] sm:$0x3] }
 0xa71   :  { %3779 = vmatmul.mubr.msk.f32.vlgmr.msra.gmra.mrb[20].mxu0 %vm87_vm1, %v3346_v41 }
 0xa72   :  { %v4731_v42 = vsel %vm1551_vm2, %v1369_v31, %v4671_v36  ;;  %v1538_v36 = vsub.f32 1.0, %v4199_v17  ;;  %4069 = vmatpush3.bf16.msra.mxu0 %v4443_v19  ;;  %3800 = vmatprep.mubr.msk.f32.mxu0 %vm4287_vm0, %v4288_v11 }
 0xa73   :  { %1636 = vrot.lane.b32.xlu1 %v4731_v42, %s4291_s3  ;;  %4070 = vmatprep.subr.bf16.mxu0 %v4286_v3 }
 0xa76   :  { %4072 = vmatpush3.bf16.msra.mxu0 %v4465_v25 }
 0xa77   :  { %4079 = vmatprep.subr.bf16.mxu0 %v4286_v3 }
 0xa7b   :  { %v1541_v46 = vpop.permute.xlu0 %1540 }
 0xa7c   :  { %v1543_v48 = vmul.f32 %v1541_v46, %v1538_v36 }
 0xa7e   :  { %v1545_v49 = vadd.f32 %v1544_v38, %v1543_v48 }
 0xa80   :  { %v4747_v51 = vsel %vm1558_vm3, %v1545_v49, %v4687_v45  ;;  %v1631_v45 = vpop.f32.mrb[16].mxu0  ;;  %v3350_v49 = vld [vmem:[%s5076_s25 + $0xa] sm:$0x3] }
 0xa81   :  { %1812 = vrot.lane.b32.xlu0 %v4747_v51, %s4291_s3  ;;  %v3736_v55 = vpop.f32.mrb[17].mxu0  ;;  %v1632_v0 = vadd.f32 %v4514_v40, %v1631_v45  ;;  %3801 = vmatmul.mubr.msk.f32.vlgmr.msra.gmra.mrb[22].mxu0 %vm87_vm1, %v3350_v49  ;;  %v3358_v49 = vld [vmem:[%s5076_s25 + $0xc] sm:$0x3] }
 0xa82   :  { %v1807_v56 = vpop.f32.mrb[18].mxu0  ;;  %4081 = vmatpush3.bf16.msra.mxu0 %v4396_v4  ;;  %3822 = vmatprep.mubr.msk.f32.mxu0 %vm4287_vm0, %v4288_v11 }
 0xa83   :  { %v3758_v57 = vpop.f32.mrb[19].mxu0  ;;  %v1808_v6 = vadd.f32 %v4520_v43, %v1807_v56  ;;  %4082 = vmatprep.subr.bf16.mxu0 %v4286_v3 }
 0xa86   :  { %4084 = vmatpush3.bf16.msra.mxu0 %v4420_v12 }
 0xa87   :  { %4091 = vmatprep.subr.bf16.mxu0 %v4286_v3 }
 0xa89   :  { %3823 = vmatmul.mubr.msk.f32.vlgmr.msra.gmra.mrb[24].mxu0 %vm87_vm1, %v3354_v1 }
 0xa8a   :  { %4093 = vmatpush3.bf16.msra.mxu0 %v4443_v19  ;;  %3844 = vmatprep.mubr.msk.f32.mxu0 %vm4287_vm0, %v4288_v11 }
 0xa8b   :  { %4094 = vmatprep.subr.bf16.mxu0 %v4286_v3 }
 0xa8e   :  { %4096 = vmatpush3.bf16.msra.mxu0 %v4465_v25 }
 0xa8f   :  { %4103 = vmatprep.subr.bf16.mxu0 %v4286_v3 }
 0xa91   :  { %3845 = vmatmul.mubr.msk.f32.vlgmr.msra.gmra.mrb[26].mxu0 %vm87_vm1, %v3358_v49 }
 0xa92   :  { %4105 = vmatpush3.bf16.msra.mxu0 %v4396_v4  ;;  %3866 = vmatprep.mubr.msk.f32.mxu0 %vm4287_vm0, %v4288_v11 }
 0xa93   :  { %4106 = vmatprep.subr.bf16.mxu0 %v4286_v3 }
 0xa96   :  { %4108 = vmatpush3.bf16.msra.mxu0 %v4420_v12 }
 0xa97   :  { %4115 = vmatprep.subr.bf16.mxu0 %v4286_v3 }
 0xae5   :  { %v1637_v53 = vpop.permute.xlu1 %1636 }
 0xae6   :  { %3746 = vmatmul.mubr.msk.f32.vlgmr.msra.gmra.mrb[16].mxu1 %vm87_vm1, %v1637_v53 }
 0xae7   :  { %4051 = vmatpush3.bf16.msra.mxu1 %v4446_v20  ;;  %3767 = vmatprep.mubr.msk.f32.mxu1 %vm4287_vm0, %v4288_v11 }
 0xae8   :  { %4052 = vmatprep.subr.bf16.mxu1 %v4286_v3 }
 0xaeb   :  { %4054 = vmatpush3.bf16.msra.mxu1 %v4468_v26 }
 0xaec   :  { %4061 = vmatprep.subr.bf16.mxu1 %v4286_v3 }
 0xaf3   :  { %v1813_v54 = vpop.permute.xlu0 %1812 }
 0xaf4   :  { %3768 = vmatmul.mubr.msk.f32.vlgmr.msra.gmra.mrb[18].mxu1 %vm87_vm1, %v1813_v54 }
 0xaf5   :  { %4063 = vmatpush3.bf16.msra.mxu1 %v4407_v8  ;;  %3789 = vmatprep.mubr.msk.f32.mxu1 %vm4287_vm0, %v4288_v11 }
 0xaf6   :  { %4064 = vmatprep.subr.bf16.mxu1 %v4286_v3 }
 0xaf9   :  { %4066 = vmatpush3.bf16.msra.mxu1 %v4424_v13 }
 0xafa   :  { %4073 = vmatprep.subr.bf16.mxu1 %v4286_v3 }
 0xbb9   :  { %v1706_v58 = vpop.f32.mrb[16].mxu1 }
 0xbba   :  { %v1707_v59 = vadd.f32 %v4500_v28, %v1706_v58  ;;  %v3747_v60 = vpop.f32.mrb[17].mxu1 }
 0xbbc   :  { %1718 = vrot.lane.b32.xlu1 %v1707_v59, %s4289_s28  ;;  %v1710_v2 = vadd.f32 %v1707_v59, %v1632_v0 }
 0xbbe   :  { %v3341_v5 = vmul.f32 -1.442695, %v1710_v2 }
 0xbc0   :  { %4204 = vpow2.f32 %v3341_v5 }
 0xbc7   :  { %v1882_v61 = vpop.f32.mrb[18].mxu1 }
 0xbc8   :  { %v1883_v62 = vadd.f32 %v4507_v34, %v1882_v61  ;;  %v3769_v63 = vpop.f32.mrb[19].mxu1 }
 0xbca   :  { %1894 = vrot.lane.b32.xlu0 %v1883_v62, %s4289_s28  ;;  %v1886_v7 = vadd.f32 %v1883_v62, %v1808_v6  ;;  %v4205_v9 = vpop.eup %4204 }
 0xbcb   :  { %v1714_v14 = vadd.f32 1.0, %v4205_v9 }
 0xbcc   :  { %v3345_v10 = vmul.f32 -1.442695, %v1886_v7 }
 0xbce   :  { %4206 = vpow2.f32 %v3345_v10 }
 0xbcf   :  { %4208 = vrcp.f32 %v1714_v14 }
 0xbd8   :  { %v4207_v15 = vpop.eup %4206 }
 0xbd9   :  { %v4209_v16 = vpop.eup %4208  ;;  %v1890_v17 = vadd.f32 1.0, %v4207_v15 }
 0xbda   :  { %v1728_v31 = vsub.f32 1.0, %v4209_v16  ;;  %v1734_v46 = vmul.f32 %v4209_v16, %v4731_v42 }
 0xbdb   :  { %4210 = vrcp.f32 %v1890_v17 }
 0xbe5   :  { %v4211_v27 = vpop.eup %4210 }
 0xbe6   :  { %v1910_v45 = vmul.f32 %v4211_v27, %v4747_v51 }
 0xc2e   :  { %v1719_v21 = vpop.permute.xlu1 %1718 }
 0xc2f   :  { %v1721_v22 = vmul.f32 %v4209_v16, %v1719_v21 }
 0xc31   :  { %1723 = vrot.lane.b32.xlu1 %v1721_v22, %s4289_s28 }
 0xc35   :  { %1915 = vperm.xlu1 %4155, %v1913_v23  }
 0xc39   :  { %1922 = vperm.xlu1 %4155, %v1920_v24  }
 0xc3c   :  { %v1895_v30 = vpop.permute.xlu0 %1894 }
 0xc3d   :  { %v1897_v18 = vmul.f32 %v4211_v27, %v1895_v30 }
 0xc3f   :  { %1899 = vrot.lane.b32.xlu0 %v1897_v18, %s4289_s28 }
 0xca3   :  { %v1724_v32 = vpop.permute.xlu1 %1723 }
 0xca4   :  { %v1726_v33 = vadd.f32 %v1724_v32, %v1632_v0 }
 0xca6   :  { %4212 = vtanh.f32 %v1726_v33 }
 0xcb0   :  { %v4213_v35 = vpop.eup %4212 }
 0xcb1   :  { %1730 = vrot.lane.b32.xlu0 %v4213_v35, %s4291_s3  ;;  %v1900_v37 = vpop.permute.xlu0 %1899 }
 0xcb2   :  { %v1902_v29 = vadd.f32 %v1900_v37, %v1808_v6 }
 0xcb4   :  { %4214 = vtanh.f32 %v1902_v29  ;;  %v1916_v36 = vpop.permute.xlu1 %1915 }
 0xcb5   :  { %vm1917_vm6 = vcmp.eq.s32.totalorder %v1916_v36, 1 }
 0xcb8   :  { %v1923_v54 = vpop.permute.xlu1 %1922 }
 0xcb9   :  { %vm1924_vm7 = vcmp.eq.s32.totalorder %v1923_v54, 1 }
 0xcbe   :  { %v4215_v39 = vpop.eup %4214 }
 0xcbf   :  { %1906 = vrot.lane.b32.xlu0 %v4215_v39, %s4291_s3 }
 0xd23   :  { %v1731_v44 = vpop.permute.xlu0 %1730 }
 0xd24   :  { %v1733_v47 = vmul.f32 %v1731_v44, %v1728_v31 }
 0xd26   :  { %v1735_v38 = vadd.f32 %v1734_v46, %v1733_v47 }
 0xd28   :  { %v4791_v48 = vsel %vm1917_vm6, %v1735_v38, %v4731_v42  ;;  %v1904_v42 = vsub.f32 1.0, %v4211_v27 }
 0xd29   :  { %2002 = vrot.lane.b32.xlu1 %v4791_v48, %s4291_s3 }
 0xd31   :  { %v1907_v53 = vpop.permute.xlu0 %1906 }
 0xd32   :  { %v1909_v55 = vmul.f32 %v1907_v53, %v1904_v42 }
 0xd34   :  { %v1911_v56 = vadd.f32 %v1910_v45, %v1909_v55 }
 0xd36   :  { %v4807_v57 = vsel %vm1924_vm7, %v1911_v56, %v4747_v51  ;;  %v1997_v51 = vpop.f32.mrb[20].mxu0 }
 0xd37   :  { %2178 = vrot.lane.b32.xlu0 %v4807_v57, %s4291_s3  ;;  %v3780_v60 = vpop.f32.mrb[21].mxu0  ;;  %v1998_v9 = vadd.f32 %v4514_v40, %v1997_v51  ;;  %v2279_v40 = vsel %vm2278_vm8, 1, %v4290_v52 }
 0xd38   :  { %v2173_v61 = vpop.f32.mrb[22].mxu0 }
 0xd39   :  { %v3802_v62 = vpop.f32.mrb[23].mxu0  ;;  %v2174_v15 = vadd.f32 %v4520_v43, %v2173_v61  ;;  %v2286_v43 = vsel %vm2285_vm9, 1, %v4290_v52  ;;  %v4888_v61 = vld [vmem:[%s5059_s6] ss:$0 sm:$0xff] }
 0xd9b   :  { %v2003_v58 = vpop.permute.xlu1 %2002 }
 0xd9c   :  { %3790 = vmatmul.mubr.msk.f32.vlgmr.msra.gmra.mrb[20].mxu1 %vm87_vm1, %v2003_v58 }
 0xd9d   :  { %4075 = vmatpush3.bf16.msra.mxu1 %v4446_v20  ;;  %3811 = vmatprep.mubr.msk.f32.mxu1 %vm4287_vm0, %v4288_v11 }
 0xd9e   :  { %4076 = vmatprep.subr.bf16.mxu1 %v4286_v3 }
 0xda1   :  { %4078 = vmatpush3.bf16.msra.mxu1 %v4468_v26 }
 0xda2   :  { %4085 = vmatprep.subr.bf16.mxu1 %v4286_v3 }
 0xda9   :  { %v2179_v59 = vpop.permute.xlu0 %2178 }
 0xdaa   :  { %3812 = vmatmul.mubr.msk.f32.vlgmr.msra.gmra.mrb[22].mxu1 %vm87_vm1, %v2179_v59 }
 0xdab   :  { %4087 = vmatpush3.bf16.msra.mxu1 %v4407_v8  ;;  %3833 = vmatprep.mubr.msk.f32.mxu1 %vm4287_vm0, %v4288_v11 }
 0xdac   :  { %4088 = vmatprep.subr.bf16.mxu1 %v4286_v3 }
 0xdaf   :  { %4090 = vmatpush3.bf16.msra.mxu1 %v4424_v13 }
 0xdb0   :  { %4097 = vmatprep.subr.bf16.mxu1 %v4286_v3 }
 0xe6f   :  { %v2072_v63 = vpop.f32.mrb[20].mxu1 }
 0xe70   :  { %v2073_v0 = vadd.f32 %v4500_v28, %v2072_v63  ;;  %v3791_v2 = vpop.f32.mrb[21].mxu1 }
 0xe72   :  { %2084 = vrot.lane.b32.xlu1 %v2073_v0, %s4289_s28  ;;  %v2076_v10 = vadd.f32 %v2073_v0, %v1998_v9 }
 0xe74   :  { %v3349_v14 = vmul.f32 -1.442695, %v2076_v10  ;;  %v4908_v10 = vld [vmem:[%s5062_s9] ss:$0 sm:$0xff] }
 0xe76   :  { %4216 = vpow2.f32 %v3349_v14 }
 0xe7d   :  { %v2248_v5 = vpop.f32.mrb[22].mxu1 }
 0xe7e   :  { %v2249_v6 = vadd.f32 %v4507_v34, %v2248_v5  ;;  %v3813_v7 = vpop.f32.mrb[23].mxu1  ;;  %v4902_v5 = vld [vmem:[%s5058_s5] ss:$0 sm:$0xff] }
 0xe80   :  { %2260 = vrot.lane.b32.xlu0 %v2249_v6, %s4289_s28  ;;  %v2252_v16 = vadd.f32 %v2249_v6, %v2174_v15  ;;  %v4217_v17 = vpop.eup %4216 }
 0xe81   :  { %v2080_v28 = vadd.f32 1.0, %v4217_v17 }
 0xe82   :  { %v3353_v21 = vmul.f32 -1.442695, %v2252_v16 }
 0xe84   :  { %4218 = vpow2.f32 %v3353_v21 }
 0xe85   :  { %4220 = vrcp.f32 %v2080_v28 }
 0xe8e   :  { %v4219_v22 = vpop.eup %4218 }
 0xe8f   :  { %v4221_v23 = vpop.eup %4220  ;;  %v2256_v24 = vadd.f32 1.0, %v4219_v22 }
 0xe90   :  { %v2094_v41 = vsub.f32 1.0, %v4221_v23  ;;  %v2100_v36 = vmul.f32 %v4221_v23, %v4791_v48 }
 0xe91   :  { %4222 = vrcp.f32 %v2256_v24 }
 0xe9b   :  { %v4223_v30 = vpop.eup %4222 }
 0xe9c   :  { %v2276_v54 = vmul.f32 %v4223_v30, %v4807_v57 }
 0xee4   :  { %v2085_v34 = vpop.permute.xlu1 %2084 }
 0xee5   :  { %v2087_v27 = vmul.f32 %v4221_v23, %v2085_v34 }
 0xee7   :  { %2089 = vrot.lane.b32.xlu1 %v2087_v27, %s4289_s28  ;;  %v4914_v27 = vld [vmem:[%s5055_s2] sm:$0x3] }
 0xee8   :  { %vm2644_vm12 = vcmp.gt.s32.totalorder %v4914_v27, 6  ;;  %vm3010_vm2 = vcmp.gt.s32.totalorder %v4914_v27, 7 }
 0xeeb   :  { %2281 = vperm.xlu1 %4155, %v2279_v40   ;;  %v2645_v40 = vsel %vm2644_vm12, 1, %v4290_v52 }
 0xeef   :  { %2288 = vperm.xlu1 %4155, %v2286_v43   ;;  %v4922_v43 = vld [vmem:[%s5055_s2 + $0x2] sm:$0x3] }
 0xef0   :  { %vm2651_vm13 = vcmp.gt.s32.totalorder %v4922_v43, 6  ;;  %vm3017_vm3 = vcmp.gt.s32.totalorder %v4922_v43, 7  ;;  %v3025_v43 = vld [vmem:[%s5064_s11 + $0x8] sm:$0xff] }
 0xef2   :  { %v2261_v18 = vpop.permute.xlu0 %2260 }
 0xef3   :  { %v2263_v32 = vmul.f32 %v4223_v30, %v2261_v18 }
 0xef5   :  { %2265 = vrot.lane.b32.xlu0 %v2263_v32, %s4289_s28 }
 0xf59   :  { %v2090_v33 = vpop.permute.xlu1 %2089 }
 0xf5a   :  { %v2092_v35 = vadd.f32 %v2090_v33, %v1998_v9 }
 0xf5c   :  { %4224 = vtanh.f32 %v2092_v35 }
 0xf66   :  { %v4225_v50 = vpop.eup %4224 }
 0xf67   :  { %2096 = vrot.lane.b32.xlu0 %v4225_v50, %s4291_s3  ;;  %v2266_v37 = vpop.permute.xlu0 %2265 }
 0xf68   :  { %v2268_v29 = vadd.f32 %v2266_v37, %v2174_v15 }
 0xf6a   :  { %4226 = vtanh.f32 %v2268_v29  ;;  %v2282_v44 = vpop.permute.xlu1 %2281 }
 0xf6b   :  { %vm2283_vm10 = vcmp.eq.s32.totalorder %v2282_v44, 1 }
 0xf6e   :  { %v2289_v53 = vpop.permute.xlu1 %2288 }
 0xf6f   :  { %vm2290_vm11 = vcmp.eq.s32.totalorder %v2289_v53, 1 }
 0xf74   :  { %v4227_v39 = vpop.eup %4226 }
 0xf75   :  { %2272 = vrot.lane.b32.xlu0 %v4227_v39, %s4291_s3 }
 0xfd9   :  { %v2097_v31 = vpop.permute.xlu0 %2096 }
 0xfda   :  { %v2099_v46 = vmul.f32 %v2097_v31, %v2094_v41  ;;  %v3362_v41 = vld [vmem:[%s5075_s19 + $0xe] sm:$0x3] }
 0xfdb   :  { %3867 = vmatmul.mubr.msk.f32.vlgmr.msra.gmra.mrb[28].mxu0 %vm87_vm1, %v3362_v41  ;;  %v3031_v41 = vld [vmem:[%s5065_s12 + $0x18] sm:$0xff] }
 0xfdc   :  { %v2101_v47 = vadd.f32 %v2100_v36, %v2099_v46  ;;  %4117 = vmatpush3.bf16.msra.mxu0 %v4443_v19  ;;  %3888 = vmatprep.mubr.msk.f32.mxu0 %vm4287_vm0, %v4288_v11  ;;  %v3366_v19 = vld [vmem:[%s5076_s25 + $0xe] sm:$0x3]  ;;  %s4292_s25 = smov 16  }
 0xfdd   :  { %4118 = vmatprep.subr.bf16.mxu0 %v4286_v3 }
 0xfde   :  { %v4851_v38 = vsel %vm2283_vm10, %v2101_v47, %v4791_v48  ;;  %v2270_v48 = vsub.f32 1.0, %v4223_v30  ;;  %v2652_v30 = vsel %vm2651_vm13, 1, %v4290_v52 }
 0xfdf   :  { %2368 = vrot.lane.b32.xlu1 %v4851_v38, %s4291_s3 }
 0xfe0   :  { %4120 = vmatpush3.bf16.msra.mxu0 %v4465_v25 }
 0xfe1   :  { %4127 = vmatprep.subr.bf16.mxu0 %v4286_v3 }
 0xfe3   :  { %3889 = vmatmul.mubr.msk.f32.vlgmr.msra.gmra.mrb[30].mxu0 %vm87_vm1, %v3366_v19 }
 0xfe4   :  { %3910 = vmatprep.mubr.msk.f32.mxu0 %vm4287_vm0, %v4288_v11 }
 0xfe7   :  { %v2273_v42 = vpop.permute.xlu0 %2272 }
 0xfe8   :  { %v2275_v45 = vmul.f32 %v2273_v42, %v2270_v48 }
 0xfea   :  { %v2277_v55 = vadd.f32 %v2276_v54, %v2275_v45 }
 0xfec   :  { %v4867_v56 = vsel %vm2290_vm11, %v2277_v55, %v4807_v57  ;;  %v2363_v57 = vpop.f32.mrb[24].mxu0 }
 0xfed   :  { %2544 = vrot.lane.b32.xlu0 %v4867_v56, %s4291_s3  ;;  %v3824_v58 = vpop.f32.mrb[25].mxu0  ;;  %v2364_v6 = vadd.f32 %v4902_v5, %v2363_v57 }
 0xfee   :  { %v2539_v59 = vpop.f32.mrb[26].mxu0 }
 0xfef   :  { %v3846_v51 = vpop.f32.mrb[27].mxu0  ;;  %v2540_v14 = vadd.f32 %v4908_v10, %v2539_v59 }
0x1051   :  { %v2369_v4 = vpop.permute.xlu1 %2368 }
0x1052   :  { %3834 = vmatmul.mubr.msk.f32.vlgmr.msra.gmra.mrb[24].mxu1 %vm87_vm1, %v2369_v4 }
0x1053   :  { %4099 = vmatpush3.bf16.msra.mxu1 %v4446_v20  ;;  %3855 = vmatprep.mubr.msk.f32.mxu1 %vm4287_vm0, %v4288_v11 }
0x1054   :  { %4100 = vmatprep.subr.bf16.mxu1 %v4286_v3 }
0x1057   :  { %4102 = vmatpush3.bf16.msra.mxu1 %v4468_v26 }
0x1058   :  { %4109 = vmatprep.subr.bf16.mxu1 %v4286_v3 }
0x105f   :  { %v2545_v12 = vpop.permute.xlu0 %2544 }
0x1060   :  { %3856 = vmatmul.mubr.msk.f32.vlgmr.msra.gmra.mrb[26].mxu1 %vm87_vm1, %v2545_v12 }
0x1061   :  { %4111 = vmatpush3.bf16.msra.mxu1 %v4407_v8  ;;  %3877 = vmatprep.mubr.msk.f32.mxu1 %vm4287_vm0, %v4288_v11 }
0x1062   :  { %4112 = vmatprep.subr.bf16.mxu1 %v4286_v3 }
0x1065   :  { %4114 = vmatpush3.bf16.msra.mxu1 %v4424_v13  ;;  %v4895_v13 = vld [vmem:[%s5063_s10] ss:$0 sm:$0xff] }
0x1066   :  { %4121 = vmatprep.subr.bf16.mxu1 %v4286_v3 }
0x1125   :  { %v2438_v60 = vpop.f32.mrb[24].mxu1 }
0x1126   :  { %v2439_v8 = vadd.f32 %v4888_v61, %v2438_v60  ;;  %v3835_v62 = vpop.f32.mrb[25].mxu1 }
0x1128   :  { %2450 = vrot.lane.b32.xlu1 %v2439_v8, %s4289_s28  ;;  %v2442_v7 = vadd.f32 %v2439_v8, %v2364_v6 }
0x112a   :  { %v3357_v9 = vmul.f32 -1.442695, %v2442_v7 }
0x112c   :  { %4228 = vpow2.f32 %v3357_v9 }
0x1133   :  { %v2614_v63 = vpop.f32.mrb[26].mxu1 }
0x1134   :  { %v2615_v0 = vadd.f32 %v4895_v13, %v2614_v63  ;;  %v3857_v2 = vpop.f32.mrb[27].mxu1 }
0x1136   :  { %2626 = vrot.lane.b32.xlu0 %v2615_v0, %s4289_s28  ;;  %v2618_v15 = vadd.f32 %v2615_v0, %v2540_v14  ;;  %v4229_v16 = vpop.eup %4228 }
0x1137   :  { %v2446_v21 = vadd.f32 1.0, %v4229_v16 }
0x1138   :  { %v3361_v17 = vmul.f32 -1.442695, %v2618_v15 }
0x113a   :  { %4230 = vpow2.f32 %v3361_v17 }
0x113b   :  { %4232 = vrcp.f32 %v2446_v21 }
0x1144   :  { %v4231_v28 = vpop.eup %4230 }
0x1145   :  { %v4233_v22 = vpop.eup %4232  ;;  %v2622_v23 = vadd.f32 1.0, %v4231_v28 }
0x1146   :  { %v2460_v31 = vsub.f32 1.0, %v4233_v22  ;;  %v2466_v46 = vmul.f32 %v4233_v22, %v4851_v38 }
0x1147   :  { %4234 = vrcp.f32 %v2622_v23  ;;  %v3018_v23 = vsel %vm3017_vm3, 1, %v4290_v52 }
0x1151   :  { %v4235_v18 = vpop.eup %4234 }
0x1152   :  { %v2636_v25 = vsub.f32 1.0, %v4235_v18  ;;  %v2642_v54 = vmul.f32 %v4235_v18, %v4867_v56 }
0x119a   :  { %v2451_v24 = vpop.permute.xlu1 %2450 }
0x119b   :  { %v2453_v34 = vmul.f32 %v4233_v22, %v2451_v24 }
0x119d   :  { %2455 = vrot.lane.b32.xlu1 %v2453_v34, %s4289_s28 }
0x11a1   :  { %2647 = vperm.xlu1 %4155, %v2645_v40  }
0x11a5   :  { %2654 = vperm.xlu1 %4155, %v2652_v30  }
0x11a8   :  { %v2627_v32 = vpop.permute.xlu0 %2626 }
0x11a9   :  { %v2629_v33 = vmul.f32 %v4235_v18, %v2627_v32  ;;  %v3024_v18 = vld [vmem:[%s5064_s11] sm:$0xff] }
0x11aa   :  { %v4134_v32 = vpack.c.bf16 %v3025_v43, %v3024_v18 }
0x11ab   :  { %2631 = vrot.lane.b32.xlu0 %v2629_v33, %s4289_s28  ;;  %v3027_v33 = vld [vmem:[%s5064_s11 + $0x18] sm:$0xff] }
0x120f   :  { %v2456_v35 = vpop.permute.xlu1 %2455 }
0x1210   :  { %v2458_v50 = vadd.f32 %v2456_v35, %v2364_v6 }
0x1212   :  { %4236 = vtanh.f32 %v2458_v50 }
0x121c   :  { %v4237_v37 = vpop.eup %4236 }
0x121d   :  { %2462 = vrot.lane.b32.xlu0 %v4237_v37, %s4291_s3  ;;  %v2632_v29 = vpop.permute.xlu0 %2631  ;;  %v3028_v37 = vld [vmem:[%s5065_s12] sm:$0xff] }
0x121e   :  { %v2634_v39 = vadd.f32 %v2632_v29, %v2540_v14  ;;  %v3029_v29 = vld [vmem:[%s5065_s12 + $0x8] sm:$0xff] }
0x1220   :  { %4238 = vtanh.f32 %v2634_v39  ;;  %v2648_v36 = vpop.permute.xlu1 %2647  ;;  %v3030_v39 = vld [vmem:[%s5065_s12 + $0x10] sm:$0xff] }
0x1221   :  { %vm2649_vm14 = vcmp.eq.s32.totalorder %v2648_v36, 1 }
0x1224   :  { %v2655_v53 = vpop.permute.xlu1 %2654 }
0x1225   :  { %vm2656_vm15 = vcmp.eq.s32.totalorder %v2655_v53, 1 }
0x122a   :  { %v4239_v1 = vpop.eup %4238 }
0x122b   :  { %2638 = vrot.lane.b32.xlu0 %v4239_v1, %s4291_s3  ;;  %v4128_v1 = vpack.c.bf16 %v3029_v29, %v3028_v37 }
0x122d   :  { %4129 = vmatpush3.bf16.msra.mxu0 %v4128_v1 }
0x122e   :  { %4130 = vmatprep.subr.bf16.mxu0 %v4286_v3 }
0x128f   :  { %v2463_v44 = vpop.permute.xlu0 %2462 }
0x1290   :  { %v2465_v47 = vmul.f32 %v2463_v44, %v2460_v31  ;;  %v4131_v44 = vpack.c.bf16 %v3031_v41, %v3030_v39 }
0x1292   :  { %v2467_v49 = vadd.f32 %v2466_v46, %v2465_v47  ;;  %4132 = vmatpush3.bf16.msra.mxu0 %v4131_v44 }
0x1293   :  { %4139 = vmatprep.subr.bf16.mxu0 %v4286_v3 }
0x1294   :  { %v4941_v48 = vsel %vm2649_vm14, %v2467_v49, %v4851_v38 }
0x1295   :  { %2734 = vrot.lane.b32.xlu1 %v4941_v48, %s4291_s3 }
0x129d   :  { %v2639_v42 = vpop.permute.xlu0 %2638 }
0x129e   :  { %v2641_v45 = vmul.f32 %v2639_v42, %v2636_v25 }
0x12a0   :  { %v2643_v38 = vadd.f32 %v2642_v54, %v2641_v45 }
0x12a2   :  { %v4953_v55 = vsel %vm2656_vm15, %v2643_v38, %v4867_v56  ;;  %v2729_v56 = vpop.f32.mrb[28].mxu0 }
0x12a3   :  { %2910 = vrot.lane.b32.xlu0 %v4953_v55, %s4291_s3  ;;  %v3868_v57 = vpop.f32.mrb[29].mxu0  ;;  %v2730_v63 = vadd.f32 %v4902_v5, %v2729_v56  ;;  %v3011_v5 = vsel %vm3010_vm2, 1, %v4290_v52  ;;  %v3026_v52 = vld [vmem:[%s5064_s11 + $0x10] sm:$0xff] }
0x12a4   :  { %v2905_v58 = vpop.f32.mrb[30].mxu0  ;;  %v4137_v35 = vpack.c.bf16 %v3027_v33, %v3026_v52 }
0x12a5   :  { %v3890_v59 = vpop.f32.mrb[31].mxu0  ;;  %v2906_v6 = vadd.f32 %v4908_v10, %v2905_v58  ;;  %v3192_v58 = vld [vmem:[%s5067_s14 + $0x8] sm:$0xff] }
0x1307   :  { %v2735_v4 = vpop.permute.xlu1 %2734 }
0x1308   :  { %3878 = vmatmul.mubr.msk.f32.vlgmr.msra.gmra.mrb[28].mxu1 %vm87_vm1, %v2735_v4 }
0x1309   :  { %4123 = vmatpush3.bf16.msra.mxu1 %v4446_v20  ;;  %3899 = vmatprep.mubr.msk.f32.mxu1 %vm4287_vm0, %v4288_v11 }
0x130a   :  { %4124 = vmatprep.subr.bf16.mxu1 %v4286_v3 }
0x130d   :  { %4126 = vmatpush3.bf16.msra.mxu1 %v4468_v26 }
0x130e   :  { %4133 = vmatprep.subr.bf16.mxu1 %v4286_v3 }
0x1315   :  { %v2911_v12 = vpop.permute.xlu0 %2910 }
0x1316   :  { %3900 = vmatmul.mubr.msk.f32.vlgmr.msra.gmra.mrb[30].mxu1 %vm87_vm1, %v2911_v12 }
0x1317   :  { %3921 = vmatprep.mubr.msk.f32.mxu1 %vm4287_vm0, %v4288_v11  ;;  %4135 = vmatpush3.bf16.msra.mxu1 %v4134_v32 }
0x1318   :  { %4136 = vmatprep.subr.bf16.mxu1 %v4286_v3 }
0x131b   :  { %4138 = vmatpush3.bf16.msra.mxu1 %v4137_v35 }
0x13db   :  { %v2804_v20 = vpop.f32.mrb[28].mxu1 }
0x13dc   :  { %v2805_v51 = vadd.f32 %v4888_v61, %v2804_v20  ;;  %v3879_v60 = vpop.f32.mrb[29].mxu1  ;;  %v3194_v20 = vld [vmem:[%s5067_s14 + $0x18] sm:$0xff] }
0x13de   :  { %2816 = vrot.lane.b32.xlu1 %v2805_v51, %s4289_s28  ;;  %v2808_v0 = vadd.f32 %v2805_v51, %v2730_v63 }
0x13e0   :  { %v3365_v2 = vmul.f32 -1.442695, %v2808_v0 }
0x13e2   :  { %4240 = vpow2.f32 %v3365_v2 }
0x13e9   :  { %v2980_v8 = vpop.f32.mrb[30].mxu1 }
0x13ea   :  { %v2981_v26 = vadd.f32 %v4895_v13, %v2980_v8  ;;  %v3901_v62 = vpop.f32.mrb[31].mxu1 }
0x13eb   :  { %v3372_v62 = vld [vmem:[%s5066_s13] ss:$0 sm:$0xff]  ;;  %s4293_s13 = smov 112  }
0x13ec   :  { %2992 = vrot.lane.b32.xlu0 %v2981_v26, %s4289_s28  ;;  %v2984_v7 = vadd.f32 %v2981_v26, %v2906_v6  ;;  %v4241_v9 = vpop.eup %4240 }
0x13ed   :  { %v2812_v61 = vadd.f32 1.0, %v4241_v9 }
0x13ee   :  { %v3369_v14 = vmul.f32 -1.442695, %v2984_v7 }
0x13f0   :  { %4242 = vpow2.f32 %v3369_v14 }
0x13f1   :  { %4244 = vrcp.f32 %v2812_v61 }
0x13fa   :  { %v4243_v15 = vpop.eup %4242 }
0x13fb   :  { %v4245_v16 = vpop.eup %4244  ;;  %v2988_v17 = vadd.f32 1.0, %v4243_v15 }
0x13fc   :  { %v2826_v36 = vsub.f32 1.0, %v4245_v16  ;;  %v2832_v47 = vmul.f32 %v4245_v16, %v4941_v48 }
0x13fd   :  { %4246 = vrcp.f32 %v2988_v17 }
0x1407   :  { %v4247_v10 = vpop.eup %4246 }
0x1408   :  { %v3002_v53 = vsub.f32 1.0, %v4247_v10  ;;  %v3008_v45 = vmul.f32 %v4247_v10, %v4953_v55 }
0x1450   :  { %v2817_v13 = vpop.permute.xlu1 %2816 }
0x1451   :  { %v2819_v21 = vmul.f32 %v4245_v16, %v2817_v13 }
0x1453   :  { %2821 = vrot.lane.b32.xlu1 %v2819_v21, %s4289_s28 }
0x1457   :  { %3013 = vperm.xlu1 %4155, %v3011_v5  }
0x145e   :  { %v2993_v28 = vpop.permute.xlu0 %2992 }
0x145f   :  { %v2995_v22 = vmul.f32 %v4247_v10, %v2993_v28 }
0x1461   :  { %2997 = vrot.lane.b32.xlu0 %v2995_v22, %s4289_s28 }
0x1465   :  { %3020 = vperm.xlu0 %4154, %v3018_v23  }
0x14c5   :  { %v2822_v24 = vpop.permute.xlu1 %2821 }
0x14c6   :  { %v2824_v34 = vadd.f32 %v2822_v24, %v2730_v63 }
0x14c8   :  { %4248 = vtanh.f32 %v2824_v34 }
0x14d2   :  { %v4249_v27 = vpop.eup %4248 }
0x14d3   :  { %2828 = vrot.lane.b32.xlu1 %v4249_v27, %s4291_s3  ;;  %v2998_v40 = vpop.permute.xlu0 %2997 }
0x14d4   :  { %v3000_v30 = vadd.f32 %v2998_v40, %v2906_v6 }
0x14d6   :  { %4250 = vtanh.f32 %v3000_v30  ;;  %v3014_v31 = vpop.permute.xlu1 %3013 }
0x14d7   :  { %vm3015_vm4 = vcmp.eq.s32.totalorder %v3014_v31, 1 }
0x14e0   :  { %v4251_v50 = vpop.eup %4250 }
0x14e1   :  { %3004 = vrot.lane.b32.xlu0 %v4251_v50, %s4291_s3 }
0x14e4   :  { %v3021_v42 = vpop.permute.xlu0 %3020 }
0x14e5   :  { %vm3022_vm5 = vcmp.eq.s32.totalorder %v3021_v42, 1 }
0x1545   :  { %v2829_v46 = vpop.permute.xlu1 %2828 }
0x1546   :  { %v2831_v49 = vmul.f32 %v2829_v46, %v2826_v36 }
0x1548   :  { %v2833_v19 = vadd.f32 %v2832_v47, %v2831_v49 }
0x154a   :  { %v3016_v25 = vsel %vm3015_vm4, %v2833_v19, %v4941_v48  ;;  %v3191_v48 = vld [vmem:[%s5067_s14] sm:$0xff] }
0x154b   :  { %3108 = vrot.lane.b32.xlu0 %v3016_v25, %s4291_s3  ;;  %v4140_v59 = vpack.c.bf16 %v3192_v58, %v3191_v48 }
0x1553   :  { %v3005_v54 = vpop.permute.xlu0 %3004 }
0x1554   :  { %v3007_v38 = vmul.f32 %v3005_v54, %v3002_v53 }
0x1556   :  { %v3009_v4 = vadd.f32 %v3008_v45, %v3007_v38 }
0x1558   :  { %v3023_v12 = vsel %vm3022_vm5, %v3009_v4, %v4953_v55  ;;  %v3193_v55 = vld [vmem:[%s5067_s14 + $0x10] sm:$0xff] }
0x1559   :  { %3033 = vrot.lane.b32.xlu1 %v3023_v12, %s4291_s3  ;;  %v4143_v51 = vpack.c.bf16 %v3194_v20, %v3193_v55 }
0x15bd   :  { %v3109_v56 = vpop.permute.xlu0 %3108 }
0x15be   :  { %3922 = vmatmul.mubr.msk.f32.vlgmr.msra.gmra.mrb[32].mxu1 %vm87_vm1, %v3109_v56 }
0x15cb   :  { %v3034_v57 = vpop.permute.xlu1 %3033 }
0x15cc   :  { %3911 = vmatmul.mubr.msk.f32.vlgmr.msra.gmra.mrb[32].mxu0 %vm87_vm1, %v3034_v57 }
0x15cd   :  { %3932 = vmatprep.mubr.msk.f32.mxu0 %vm4287_vm0, %v4288_v11  ;;  %4141 = vmatpush3.bf16.msra.mxu0 %v4140_v59  ;;  %v3278_v11 = vld [vmem:[%s5069_s16] sm:$0x3]  ;;  %s4294_s16 = smov [#allocation2]   ;;  %vm3289_vm0 = vcmask 123904  }
0x15ce   :  { %4142 = vmatprep.subr.bf16.mxu0 %v4286_v3  ;;  %3280 = vrot.lane.b32.xlu1 %v3278_v11, %s4292_s25  ;;  %v3373_v3 = vld [vmem:[%s5068_s15] ss:$0 sm:$0xff]  ;;  %s3297_s28 = sshll.u32 %s4294_s16, 4  ;;  %s3298_s28 = int_to_ptr.vmem [resolvable:$true] %s3297_s28 }
0x15cf   :  { %s4262_s30 = scalar_lea.vmem %s3298_s28, 32  ;;  %p4267_p1 = scmp.lt.s32.totalorder %s3298_s28, %s3298_s28 }
0x15d0   :  { %p4263_p0 = scmp.ne.s32.totalorder %s3298_s28, %s4262_s30  ;;  %p4268_p2 = scmp.lt.s32.totalorder %s4262_s30, %s4262_s30 }
0x15d1   :  { %4144 = vmatpush3.bf16.msra.mxu0 %v4143_v51 }
0x15d2   :  { %p4269_p3 = por %p4268_p2, %p4267_p1 }
0x15d4   :  { %p4270_p4 = pnand %p4269_p3, %p4263_p0 }
0x1640   :  { %v3281_v16 = vpop.permute.xlu1 %3280 }
0x1691   :  { %v3178_v60 = vpop.f32.mrb[32].mxu1 }
0x1692   :  { %v3923_v8 = vpop.f32.mrb[33].mxu1 }
0x169f   :  { %v3103_v26 = vpop.f32.mrb[32].mxu0 }
0x16a0   :  { %v3179_v63 = vadd.f32 %v3178_v60, %v3103_v26  ;;  %v3912_v0 = vpop.f32.mrb[33].mxu0 }
0x16a2   :  { %v3189_v2 = vadd.f32 %v3372_v62, %v3179_v63 }
0x16a4   :  { %4252 = vtanh.f32 %v3189_v2 }
0x16ae   :  { %v4253_v6 = vpop.eup %4252 }
0x16af   :  { %3933 = vmatmul.mubr.msk.f32.vlgmr.msra.gmra.mrb[34].mxu0 %vm87_vm1, %v4253_v6 }
0x1782   :  { %v3271_v7 = vpop.f32.mrb[34].mxu0 }
0x1783   :  { %v3272_v9 = vadd.f32 %v3373_v3, %v3271_v7  ;;  %v3934_v14 = vpop.f32.mrb[35].mxu0 }
0x1785   :  { %v3275_v61 = vmul.f32 0.5, %v3272_v9 }
0x1787   :  { %v3276_v15 = vmul.f32 1.442695, %v3275_v61 }
0x1789   :  { %4254 = vpow2.f32 %v3276_v15 }
0x1793   :  { %v4255_v17 = vpop.eup %4254 }
0x1794   :  { %v3283_v13 = vmul.f32 %v4255_v17, %v3281_v16 }
0x1796   :  { %3285 = vrot.lane.b32.xlu0 %v3283_v13, %s4293_s13 }
0x1808   :  { %v3286_v21 = vpop.permute.xlu0 %3285 }
0x1809   :  { %v3288_v5 = vadd.f32 %v3286_v21, %v3272_v9 }
0x180b   :  { %3290 = vst.msk [vmem:[#allocation2] sm:$0x3] %vm3289_vm0, %v3288_v5 }
0x180c   :  { %4273 = shalt.err (!%p4270_p4)
}
0x180d   :  { %s4274_s1 = scalar_lea.hbm %s5070_s17, 32 }
0x180e   :  { %p4275_p5 = scmp.ne.s32.totalorder %s5070_s17, %s4274_s1  ;;  %p4278_p6 = scmp.lt.u32.totalorder %s4274_s1, %s5070_s17 }
0x1810   :  { %p4280_p7 = pnand %p4278_p6, %p4275_p5 }
0x1812   :  { %4283 = shalt.err (!%p4280_p7)
}
0x1813   :  { %3300 = dma.vmem_to_hbm [thread:$0]  %s3298_s28, 32, %s5070_s17, [#allocation3]  }
0x1814   :  { %4284 = dma.done.wait [#allocation3], 32  }
0x1815   :  { %4285 = vsyncadd [#allocation3], 4294967264 }
0x1816   :  { %3304 = vsyncpa [#allocation3], 1 }

</bundles_post_ra>
